<compile_context>
chip_gen: v5e
topology: v5e:2x2
jax: 0.10.0
libtpu: 0.0.40
codegen_flags: <defaults>
</compile_context>

<pallas_src>
import jax
import jax.numpy as jnp
from jax.experimental import pallas as pl
from jax.experimental.pallas import tpu as pltpu


# ---------------------------------------------------------------------------
# Kernel 1: single-layer LSTM (batch_first).  One batch tile per grid step;
# the full time loop runs inside the kernel.
# ---------------------------------------------------------------------------
def _lstm_kernel(emb_ref, h0_ref, c0_ref, wih_ref, whh_ref, b_ref,
                 xout_ref, h1_ref, c1_ref, gx_scr, hall_scr):
    """
    emb_ref : (BB, T, E)   embeddings for this batch tile
    h0_ref  : (BB, H)      initial hidden
    c0_ref  : (BB, H)      initial cell
    wih_ref : (E, 4H)      W_ih^T
    whh_ref : (H, 4H)      W_hh^T
    b_ref   : (1, 4H)      b_ih + b_hh
    xout_ref: (BB, T, H)   per-step hidden outputs
    h1_ref  : (BB, H)      final hidden
    c1_ref  : (BB, H)      final cell
    gx_scr  : (T, BB, 4H)  precomputed input-projection gates (VMEM scratch)
    hall_scr: (T, BB, H)   per-step hidden states (VMEM scratch)
    """
    BB, T, E = emb_ref.shape
    H = h0_ref.shape[-1]

    # Hoisted, MXU-efficient input projection: one (BB*T, E) @ (E, 4H) matmul.
    gx = jnp.dot(emb_ref[...].reshape(BB * T, E), wih_ref[...],
                 preferred_element_type=jnp.float32) + b_ref[...]
    # (T, BB, 4H) layout -> cheap dynamic leading-axis reads inside the loop.
    gx_scr[...] = jnp.transpose(gx.reshape(BB, T, 4 * H), (1, 0, 2))

    def step(t, carry):
        h, c = carry
        # Only the recurrent half stays on the critical path.
        gates = gx_scr[t] + jnp.dot(h, whh_ref[...],
                                    preferred_element_type=jnp.float32)  # (BB, 4H)
        # PyTorch gate order: i, f, g, o.  (At H % 128 == 0 -- e.g. H = 512 in real
        # configs -- these slices are lane-aligned vreg views.)
        i_g = jax.nn.sigmoid(gates[:, 0 * H:1 * H])
        f_g = jax.nn.sigmoid(gates[:, 1 * H:2 * H])
        g_g = jnp.tanh(gates[:, 2 * H:3 * H])
        o_g = jax.nn.sigmoid(gates[:, 3 * H:4 * H])
        c = f_g * c + i_g * g_g
        h = o_g * jnp.tanh(c)
        hall_scr[t] = h
        return (h, c)

    h_fin, c_fin = jax.lax.fori_loop(0, T, step, (h0_ref[...], c0_ref[...]),
                                     unroll=True)

    # Emit (BB, T, H) directly so the attention kernel needs no wrapper transpose.
    xout_ref[...] = jnp.transpose(hall_scr[...], (1, 0, 2)).astype(xout_ref.dtype)
    h1_ref[...] = h_fin.astype(h1_ref.dtype)
    c1_ref[...] = c_fin.astype(c1_ref.dtype)


# ---------------------------------------------------------------------------
# Kernel 2: SoftDotAttention (output_tilde=True) fused with a vocab-tiled
# projection.  Grid = (batch_tiles, vocab_tiles); the vocab axis is the inner
# "arbitrary" axis so h_tilde (computed at v == 0) is reused from scratch.
# ---------------------------------------------------------------------------
def _attn_proj_kernel(x_ref, ctx_ref, mask_ref, w_in_ref, w_out_wc_ref,
                      w_out_h_ref, w_proj_ref, b_proj_ref, logit_ref, ht_scr):
    """
    x_ref       : (BB, T, H)   LSTM outputs for this batch tile
    ctx_ref     : (BB, S, H)   context
    mask_ref    : (BB, 1, S)   1.0 where masked, 0.0 otherwise
    w_in_ref    : (H, H)       linear_in.weight^T (bias-free)
    w_out_wc_ref: (H, H)       linear_out.weight^T rows acting on weighted_context
    w_out_h_ref : (H, H)       linear_out.weight^T rows acting on h
    w_proj_ref  : (H, TV)      vocab tile of projection.weight^T (streamed over v)
    b_proj_ref  : (1, TV)      vocab tile of projection.bias
    logit_ref   : (BB, T, TV)  lane-dense output tile
    ht_scr      : (BB*T, H)    h_tilde scratch, persists across the vocab axis
    """
    BB, T, H = x_ref.shape

    @pl.when(pl.program_id(1) == 0)
    def _():
        x2d = x_ref[...].reshape(BB * T, H)                              # (BB*T, H)
        ctx = ctx_ref[...]                                               # (BB, S, H)

        # target = linear_in(h);  attn scores = bmm(context, target)
        target = jnp.dot(x2d, w_in_ref[...],
                         preferred_element_type=jnp.float32).reshape(BB, T, H)
        scores = jnp.einsum("bth,bsh->bts", target, ctx,
                            preferred_element_type=jnp.float32)          # (BB, T, S)

        # masked_fill_(mask, -inf): large negative so exp underflows to exactly 0.
        # (Differs from PyTorch only in the degenerate all-masked-row case:
        #  uniform attention here vs. NaN there.)
        scores = scores - mask_ref[...] * 1e30
        scores = scores - jnp.max(scores, axis=-1, keepdims=True)
        p = jnp.exp(scores)
        attn = p / jnp.sum(p, axis=-1, keepdims=True)

        # weighted_context = bmm(attn, context)
        wc = jnp.einsum("bts,bsh->bth", attn, ctx,
                        preferred_element_type=jnp.float32).reshape(BB * T, H)

        # h_tilde = tanh(linear_out(cat([weighted_context, h], 1)))  (split weight)
        ht_scr[...] = jnp.tanh(
            jnp.dot(wc, w_out_wc_ref[...], preferred_element_type=jnp.float32)
            + jnp.dot(x2d, w_out_h_ref[...], preferred_element_type=jnp.float32))

    # Vocab-tiled projection: every vocab tile reuses h_tilde from scratch.
    TV = w_proj_ref.shape[-1]
    logits = jnp.dot(ht_scr[...], w_proj_ref[...],
                     preferred_element_type=jnp.float32) + b_proj_ref[...]
    logit_ref[...] = logits.reshape(BB, T, TV).astype(logit_ref.dtype)


# ---------------------------------------------------------------------------
# Tiling helpers
# ---------------------------------------------------------------------------
def _round_up(n, m):
    return ((n + m - 1) // m) * m


def _batch_tile(n, cap):
    """Largest multiple of 8 that divides n and is <= cap (assumes n % 8 == 0)."""
    best, d = 8, 8
    while d <= min(n, cap):
        if n % d == 0:
            best = d
        d += 8
    return best


def _vocab_tile(v, cap=2048):
    """Largest multiple of 128 dividing v, capped so the streamed (H, TV) weight
    tile double-buffers comfortably inside v7x's 64 MiB VMEM at realistic H."""
    t = min(v, cap) - min(v, cap) % 128
    while t >= 128:
        if v % t == 0:
            return t
        t -= 128
    return v


# ---------------------------------------------------------------------------
# Wrapper
# ---------------------------------------------------------------------------
def speaker_decoder_forward(prep, words, ctx, ctx_mask, h0, c0):
    """JAX wrapper mirroring SpeakerDecoder.forward(words, ctx, ctx_mask, h0, c0)."""
    B, T = words.shape
    S = ctx.shape[1]
    E = prep["emb"].shape[1]
    H = prep["w_in_t"].shape[0]
    V = prep["w_proj_t"].shape[1]

    # Pad batch to a multiple of 8 sublanes (padded rows are sliced off at the end).
    BP = _round_up(max(B, 8), 8)
    pad = BP - B
    if pad:
        words = jnp.pad(words, ((0, pad), (0, 0)))
        ctx = jnp.pad(ctx, ((0, pad), (0, 0), (0, 0)))
        ctx_mask = jnp.pad(ctx_mask, ((0, pad), (0, 0)))
        h0 = jnp.pad(h0, ((0, 0), (0, pad), (0, 0)))
        c0 = jnp.pad(c0, ((0, 0), (0, pad), (0, 0)))

    # Embedding lookup (data-dependent gather) stays in XLA.
    # TODO(synk): a pure-Pallas embedding would need a manual DMA row gather.
    embeds = jnp.take(prep["emb"], words, axis=0)          # (BP, T, E)
    # nn.Dropout == identity in eval mode.

    # ---- Kernel 1: LSTM (time loop inside the kernel, batch-parallel grid) ----
    BBL = _batch_tile(BP, 8)
    x_out, h1, c1 = pl.pallas_call(
        _lstm_kernel,
        out_shape=(jax.ShapeDtypeStruct((BP, T, H), jnp.float32),
                   jax.ShapeDtypeStruct((BP, H), jnp.float32),
                   jax.ShapeDtypeStruct((BP, H), jnp.float32)),
        grid=(BP // BBL,),
        in_specs=[
            pl.BlockSpec((BBL, T, E), lambda b: (b, 0, 0)),
            pl.BlockSpec((BBL, H), lambda b: (b, 0)),
            pl.BlockSpec((BBL, H), lambda b: (b, 0)),
            pl.BlockSpec((E, 4 * H), lambda b: (0, 0)),    # weights: VMEM-resident
            pl.BlockSpec((H, 4 * H), lambda b: (0, 0)),
            pl.BlockSpec((1, 4 * H), lambda b: (0, 0)),
        ],
        out_specs=(
            pl.BlockSpec((BBL, T, H), lambda b: (b, 0, 0)),
            pl.BlockSpec((BBL, H), lambda b: (b, 0)),
            pl.BlockSpec((BBL, H), lambda b: (b, 0)),
        ),
        scratch_shapes=[pltpu.VMEM((T, BBL, 4 * H), jnp.float32),
                        pltpu.VMEM((T, BBL, H), jnp.float32)],
        compiler_params=pltpu.CompilerParams(
            dimension_semantics=("parallel",),             # batch shards across TCs
            vmem_limit_bytes=32 * 1024 * 1024),
    )(embeds, h0[0], c0[0], prep["wih_t"], prep["whh_t"], prep["b_lstm"])

    # ---- Kernel 2: attention + vocab-tiled projection ----
    BBA = _batch_tile(BP, 32)          # BBA*T is the M dim of the linear layers
    TV = _vocab_tile(V)
    mask_f = ctx_mask.astype(jnp.float32)[:, None, :]      # (BP, 1, S)

    logit = pl.pallas_call(
        _attn_proj_kernel,
        out_shape=jax.ShapeDtypeStruct((BP, T, V), jnp.float32),
        grid=(BP // BBA, V // TV),
        in_specs=[
            pl.BlockSpec((BBA, T, H), lambda b, v: (b, 0, 0)),
            pl.BlockSpec((BBA, S, H), lambda b, v: (b, 0, 0)),
            pl.BlockSpec((BBA, 1, S), lambda b, v: (b, 0, 0)),
            pl.BlockSpec((H, H), lambda b, v: (0, 0)),     # small weights resident
            pl.BlockSpec((H, H), lambda b, v: (0, 0)),
            pl.BlockSpec((H, H), lambda b, v: (0, 0)),
            pl.BlockSpec((H, TV), lambda b, v: (0, v)),    # streamed vocab tile
            pl.BlockSpec((1, TV), lambda b, v: (0, v)),
        ],
        out_specs=pl.BlockSpec((BBA, T, TV), lambda b, v: (b, 0, v)),
        scratch_shapes=[pltpu.VMEM((BBA * T, H), jnp.float32)],
        compiler_params=pltpu.CompilerParams(
            dimension_semantics=("parallel", "arbitrary"),
            vmem_limit_bytes=32 * 1024 * 1024),
    )(x_out, ctx, mask_f, prep["w_in_t"], prep["w_out_wc_t"],
      prep["w_out_h_t"], prep["w_proj_t"], prep["b_proj"])

    return logit[:B], h1[:B][None], c1[:B][None]


# ---------------------------------------------------------------------------
# Parameter init (PyTorch-style) + one-time prep (all transposes / weight splits
# hoisted out of the per-call path).
# ---------------------------------------------------------------------------
def _init_torch_params(key, vocab_size, embedding_size, hidden_size, padding_idx):
    ks = jax.random.split(key, 9)
    H = hidden_size

    def uni(k, shape, fan):
        b = 1.0 / float(fan) ** 0.5
        return jax.random.uniform(k, shape, jnp.float32, -b, b)

    emb = jax.random.normal(ks[0], (vocab_size, embedding_size), jnp.float32)
    emb = emb.at[padding_idx].set(0.0)
    return {
        "embedding.weight": emb,
        "lstm.weight_ih_l0": uni(ks[1], (4 * H, embedding_size), H),
        "lstm.weight_hh_l0": uni(ks[2], (4 * H, H), H),
        "lstm.bias_ih_l0": uni(ks[3], (4 * H,), H),
        "lstm.bias_hh_l0": uni(ks[4], (4 * H,), H),
        "attn.linear_in.weight": uni(ks[5], (H, H), H),           # (ctx_dim, query_dim)
        "attn.linear_out.weight": uni(ks[6], (H, 2 * H), 2 * H),  # (query_dim, q+c)
        "projection.weight": uni(ks[7], (vocab_size, H), H),
        "projection.bias": uni(ks[8], (vocab_size,), H),
    }


def prepare_params(torch_params, hidden_size):
    H = hidden_size
    w_out = torch_params["attn.linear_out.weight"]                # (H, 2H)
    # NOTE: for v6e/v7x, casting the matmul operands below to bf16 halves weight
    # DMA/VMEM; kept f32 here for bit-exactness vs. the reference.
    return {
        "emb": torch_params["embedding.weight"],
        "wih_t": torch_params["lstm.weight_ih_l0"].T,             # (E, 4H)
        "whh_t": torch_params["lstm.weight_hh_l0"].T,             # (H, 4H)
        "b_lstm": (torch_params["lstm.bias_ih_l0"]
                   + torch_params["lstm.bias_hh_l0"]).reshape(1, 4 * H),
        "w_in_t": torch_params["attn.linear_in.weight"].T,        # (H, H)
        "w_out_wc_t": w_out[:, :H].T,                             # acts on weighted_ctx
        "w_out_h_t": w_out[:, H:].T,                              # acts on h
        "w_proj_t": torch_params["projection.weight"].T,          # (H, V)
        "b_proj": torch_params["projection.bias"].reshape(1, -1), # (1, V)
    }


# ---------------------------------------------------------------------------
# Pure-JAX reference (eval-mode SpeakerDecoder.forward)
# ---------------------------------------------------------------------------
def _reference(prep, words, ctx, ctx_mask, h0, c0):
    emb = jnp.take(prep["emb"], words, axis=0)                    # (B, T, E)
    H = h0.shape[-1]

    def step(carry, x_t):
        h, c = carry
        z = x_t @ prep["wih_t"] + h @ prep["whh_t"] + prep["b_lstm"][0]
        i = jax.nn.sigmoid(z[:, 0 * H:1 * H])
        f = jax.nn.sigmoid(z[:, 1 * H:2 * H])
        g = jnp.tanh(z[:, 2 * H:3 * H])
        o = jax.nn.sigmoid(z[:, 3 * H:4 * H])
        c = f * c + i * g
        h = o * jnp.tanh(c)
        return (h, c), h

    (h1, c1), xs = jax.lax.scan(step, (h0[0], c0[0]),
                                jnp.transpose(emb, (1, 0, 2)))
    x = jnp.transpose(xs, (1, 0, 2))                              # (B, T, H)

    target = x @ prep["w_in_t"]
    scores = jnp.einsum("bth,bsh->bts", target, ctx)
    scores = jnp.where(ctx_mask[:, None, :], -jnp.inf, scores)
    attn = jax.nn.softmax(scores, axis=-1)
    wc = jnp.einsum("bts,bsh->bth", attn, ctx)
    h_tilde = jnp.tanh(wc @ prep["w_out_wc_t"] + x @ prep["w_out_h_t"])
    logit = h_tilde @ prep["w_proj_t"] + prep["b_proj"][0]
    return logit, h1[None], c1[None]


if __name__ == "__main__":
    vocab_size = 128            # multiple of 128 -> lane-dense projection output
    embedding_size = 32
    hidden_size = 32
    padding_idx = 0
    B, T, S = 2, 8, 8           # batch, word-seq len, ctx-seq len

    key = jax.random.PRNGKey(0)
    kp, kw, kc, kh, kc0 = jax.random.split(key, 5)

    torch_params = _init_torch_params(kp, vocab_size, embedding_size,
                                      hidden_size, padding_idx)
    prep = prepare_params(torch_params, hidden_size)

    words = jax.random.randint(kw, (B, T), 1, vocab_size)
    ctx = jax.random.normal(kc, (B, S, hidden_size), jnp.float32)
    # True = position is masked; second batch row has its last 2 ctx slots masked.
    ctx_mask = jnp.arange(S)[None, :] >= jnp.array([[S], [S - 2]])
    h0 = jax.random.normal(kh, (1, B, hidden_size), jnp.float32)
    c0 = jax.random.normal(kc0, (1, B, hidden_size), jnp.float32)

    fwd = jax.jit(speaker_decoder_forward)
    logit, h1, c1 = fwd(prep, words, ctx, ctx_mask, h0, c0)
    logit, h1, c1 = jax.block_until_ready((logit, h1, c1))

    ref_logit, ref_h1, ref_c1 = _reference(prep, words, ctx, ctx_mask, h0, c0)
    assert logit.shape == (B, T, vocab_size), logit.shape
    assert h1.shape == (1, B, hidden_size) and c1.shape == (1, B, hidden_size)
    assert jnp.allclose(logit, ref_logit, atol=1e-3, rtol=1e-3), "logit mismatch"
    assert jnp.allclose(h1, ref_h1, atol=1e-3, rtol=1e-3), "h1 mismatch"
    assert jnp.allclose(c1, ref_c1, atol=1e-3, rtol=1e-3), "c1 mismatch"

    print("KERNEL_OK")
</pallas_src>

<mosaic_0001>
module attributes {stable_mosaic.version = 11 : i64} {
  func.func @_attn_proj_kernel(%arg0: i32, %arg1: i32, %arg2: memref<8x8x32xf32, #tpu.memory_space<vmem>>, %arg3: memref<8x8x32xf32, #tpu.memory_space<vmem>>, %arg4: memref<8x1x8xf32, #tpu.memory_space<vmem>>, %arg5: memref<32x32xf32, #tpu.memory_space<vmem>>, %arg6: memref<32x32xf32, #tpu.memory_space<vmem>>, %arg7: memref<32x32xf32, #tpu.memory_space<vmem>>, %arg8: memref<32x128xf32, #tpu.memory_space<vmem>>, %arg9: memref<1x128xf32, #tpu.memory_space<vmem>>, %arg10: memref<8x8x128xf32, #tpu.memory_space<vmem>>, %arg11: memref<64x32xf32, #tpu.memory_space<vmem>>) attributes {dimension_semantics = [#tpu.dimension_semantics<parallel>, #tpu.dimension_semantics<arbitrary>], iteration_bounds = array<i64: 1, 1>, scalar_prefetch = 0 : i64, scratch_operands = 1 : i64, tpu.core_type = #tpu.core_type<tc>, window_params = [{transform_indices = @transform_0, window_bounds = array<i64: 8, 8, 32>}, {transform_indices = @transform_1, window_bounds = array<i64: 8, 8, 32>}, {transform_indices = @transform_2, window_bounds = array<i64: 8, 1, 8>}, {pipeline_mode = #tpu.pipeline_mode<synchronous>, transform_indices = @transform_3, window_bounds = array<i64: 32, 32>}, {pipeline_mode = #tpu.pipeline_mode<synchronous>, transform_indices = @transform_4, window_bounds = array<i64: 32, 32>}, {pipeline_mode = #tpu.pipeline_mode<synchronous>, transform_indices = @transform_5, window_bounds = array<i64: 32, 32>}, {transform_indices = @transform_6, window_bounds = array<i64: 32, 128>}, {transform_indices = @transform_7, window_bounds = array<i64: 1, 128>}, {transform_indices = @transform_8, window_bounds = array<i64: 8, 8, 128>}]} {
    %c0_i32 = arith.constant 0 : i32
    %0 = arith.cmpi eq, %arg1, %c0_i32 : i32
    %1 = arith.extui %0 : i1 to i32
    %c0_i32_0 = arith.constant 0 : i32
    %2 = arith.cmpi ne, %1, %c0_i32_0 : i32
    scf.if %2 {
      %c0_9 = arith.constant 0 : index
      %c0_10 = arith.constant 0 : index
      %c0_11 = arith.constant 0 : index
      %11 = vector.load %arg2[%c0_9, %c0_10, %c0_11] : memref<8x8x32xf32, #tpu.memory_space<vmem>>, vector<8x8x32xf32>
      %12 = vector.shape_cast %11 : vector<8x8x32xf32> to vector<64x32xf32>
      %c0_12 = arith.constant 0 : index
      %c0_13 = arith.constant 0 : index
      %c0_14 = arith.constant 0 : index
      %13 = vector.load %arg3[%c0_12, %c0_13, %c0_14] : memref<8x8x32xf32, #tpu.memory_space<vmem>>, vector<8x8x32xf32>
      %c0_15 = arith.constant 0 : index
      %c0_16 = arith.constant 0 : index
      %14 = vector.load %arg5[%c0_15, %c0_16] : memref<32x32xf32, #tpu.memory_space<vmem>>, vector<32x32xf32>
      %cst_17 = arith.constant dense<0.000000e+00> : vector<64x32xf32>
      %15 = tpu.matmul %12, %14, %cst_17 {dimension_numbers = #tpu.dot_dimension_numbers<[1], [0], [0], [1], [0, 0, 1, 1], [], []>} : vector<64x32xf32>, vector<32x32xf32>, vector<64x32xf32> -> vector<64x32xf32>
      %16 = vector.shape_cast %15 : vector<64x32xf32> to vector<8x8x32xf32>
      "tpu.trace_start"() <{level = 10 : i32, message = "bth,bsh->bts"}> : () -> ()
      %cst_18 = arith.constant dense<0.000000e+00> : vector<8x8x8xf32>
      %17 = tpu.matmul %16, %13, %cst_18 {dimension_numbers = #tpu.dot_dimension_numbers<[2], [2], [1], [1], [0, 0, 0, 1, 1, 1], [0], [0]>} : vector<8x8x32xf32>, vector<8x8x32xf32>, vector<8x8x8xf32> -> vector<8x8x8xf32>
      "tpu.trace_stop"() : () -> ()
      %c0_19 = arith.constant 0 : index
      %c0_20 = arith.constant 0 : index
      %c0_21 = arith.constant 0 : index
      %18 = vector.load %arg4[%c0_19, %c0_20, %c0_21] : memref<8x1x8xf32, #tpu.memory_space<vmem>>, vector<8x1x8xf32>
      %cst_22 = arith.constant 1.000000e+30 : f32
      %19 = vector.broadcast %cst_22 : f32 to vector<8x1x8xf32>
      %20 = arith.mulf %18, %19 : vector<8x1x8xf32>
      %21 = vector.broadcast %20 : vector<8x1x8xf32> to vector<8x8x8xf32>
      %22 = arith.subf %17, %21 : vector<8x8x8xf32>
      %cst_23 = arith.constant dense<0xFF800000> : vector<8x8xf32>
      %23 = vector.multi_reduction <maximumf>, %22, %cst_23 [2] : vector<8x8x8xf32> to vector<8x8xf32>
      %24 = vector.shape_cast %23 : vector<8x8xf32> to vector<8x8x1xf32>
      %25 = vector.broadcast %24 : vector<8x8x1xf32> to vector<8x8x8xf32>
      %26 = arith.subf %22, %25 : vector<8x8x8xf32>
      %27 = math.exp %26 : vector<8x8x8xf32>
      %cst_24 = arith.constant dense<0.000000e+00> : vector<8x8xf32>
      %28 = vector.multi_reduction <add>, %27, %cst_24 [2] : vector<8x8x8xf32> to vector<8x8xf32>
      %29 = vector.shape_cast %28 : vector<8x8xf32> to vector<8x8x1xf32>
      %30 = vector.broadcast %29 : vector<8x8x1xf32> to vector<8x8x8xf32>
      %31 = arith.divf %27, %30 : vector<8x8x8xf32>
      "tpu.trace_start"() <{level = 10 : i32, message = "bts,bsh->bth"}> : () -> ()
      %cst_25 = arith.constant dense<0.000000e+00> : vector<8x8x32xf32>
      %32 = tpu.matmul %31, %13, %cst_25 {dimension_numbers = #tpu.dot_dimension_numbers<[2], [1], [1], [2], [0, 0, 0, 1, 1, 2], [0], [0]>} : vector<8x8x8xf32>, vector<8x8x32xf32>, vector<8x8x32xf32> -> vector<8x8x32xf32>
      "tpu.trace_stop"() : () -> ()
      %33 = vector.shape_cast %32 : vector<8x8x32xf32> to vector<64x32xf32>
      %c0_26 = arith.constant 0 : index
      %c0_27 = arith.constant 0 : index
      %34 = vector.load %arg6[%c0_26, %c0_27] : memref<32x32xf32, #tpu.memory_space<vmem>>, vector<32x32xf32>
      %cst_28 = arith.constant dense<0.000000e+00> : vector<64x32xf32>
      %35 = tpu.matmul %33, %34, %cst_28 {dimension_numbers = #tpu.dot_dimension_numbers<[1], [0], [0], [1], [0, 0, 1, 1], [], []>} : vector<64x32xf32>, vector<32x32xf32>, vector<64x32xf32> -> vector<64x32xf32>
      %c0_29 = arith.constant 0 : index
      %c0_30 = arith.constant 0 : index
      %36 = vector.load %arg7[%c0_29, %c0_30] : memref<32x32xf32, #tpu.memory_space<vmem>>, vector<32x32xf32>
      %cst_31 = arith.constant dense<0.000000e+00> : vector<64x32xf32>
      %37 = tpu.matmul %12, %36, %cst_31 {dimension_numbers = #tpu.dot_dimension_numbers<[1], [0], [0], [1], [0, 0, 1, 1], [], []>} : vector<64x32xf32>, vector<32x32xf32>, vector<64x32xf32> -> vector<64x32xf32>
      %38 = arith.addf %35, %37 : vector<64x32xf32>
      %39 = math.tanh %38 : vector<64x32xf32>
      %c0_32 = arith.constant 0 : index
      %c0_33 = arith.constant 0 : index
      %40 = vector.load %arg11[%c0_32, %c0_33] : memref<64x32xf32, #tpu.memory_space<vmem>>, vector<64x32xf32>
      tpu.vector_store %arg11[%c0_32, %c0_33], %39 {strides = array<i32>} : memref<64x32xf32, #tpu.memory_space<vmem>>, vector<64x32xf32>,
    } else {
    }
    %c0 = arith.constant 0 : index
    %c0_1 = arith.constant 0 : index
    %3 = vector.load %arg11[%c0, %c0_1] : memref<64x32xf32, #tpu.memory_space<vmem>>, vector<64x32xf32>
    %c0_2 = arith.constant 0 : index
    %c0_3 = arith.constant 0 : index
    %4 = vector.load %arg8[%c0_2, %c0_3] : memref<32x128xf32, #tpu.memory_space<vmem>>, vector<32x128xf32>
    %cst = arith.constant dense<0.000000e+00> : vector<64x128xf32>
    %5 = tpu.matmul %3, %4, %cst {dimension_numbers = #tpu.dot_dimension_numbers<[1], [0], [0], [1], [0, 0, 1, 1], [], []>} : vector<64x32xf32>, vector<32x128xf32>, vector<64x128xf32> -> vector<64x128xf32>
    %c0_4 = arith.constant 0 : index
    %c0_5 = arith.constant 0 : index
    %6 = vector.load %arg9[%c0_4, %c0_5] : memref<1x128xf32, #tpu.memory_space<vmem>>, vector<1x128xf32>
    %7 = vector.broadcast %6 : vector<1x128xf32> to vector<64x128xf32>
    %8 = arith.addf %5, %7 : vector<64x128xf32>
    %9 = vector.shape_cast %8 : vector<64x128xf32> to vector<8x8x128xf32>
    %c0_6 = arith.constant 0 : index
    %c0_7 = arith.constant 0 : index
    %c0_8 = arith.constant 0 : index
    %10 = vector.load %arg10[%c0_6, %c0_7, %c0_8] : memref<8x8x128xf32, #tpu.memory_space<vmem>>, vector<8x8x128xf32>
    tpu.vector_store %arg10[%c0_6, %c0_7, %c0_8], %9 {strides = array<i32>} : memref<8x8x128xf32, #tpu.memory_space<vmem>>, vector<8x8x128xf32>,
    return
  }
  func.func @transform_0(%arg0: i32, %arg1: i32) -> (i32, i32, i32) {
    %c0_i32 = arith.constant 0 : i32
    %c0_i32_0 = arith.constant 0 : i32
    %c0_i32_1 = arith.constant 0 : i32
    return %arg0, %c0_i32, %c0_i32_0 : i32, i32, i32
  }
  func.func @transform_1(%arg0: i32, %arg1: i32) -> (i32, i32, i32) {
    %c0_i32 = arith.constant 0 : i32
    %c0_i32_0 = arith.constant 0 : i32
    %c0_i32_1 = arith.constant 0 : i32
    return %arg0, %c0_i32, %c0_i32_0 : i32, i32, i32
  }
  func.func @transform_2(%arg0: i32, %arg1: i32) -> (i32, i32, i32) {
    %c0_i32 = arith.constant 0 : i32
    %c0_i32_0 = arith.constant 0 : i32
    %c0_i32_1 = arith.constant 0 : i32
    return %arg0, %c0_i32, %c0_i32_0 : i32, i32, i32
  }
  func.func @transform_3(%arg0: i32, %arg1: i32) -> (i32, i32) {
    %c0_i32 = arith.constant 0 : i32
    %c0_i32_0 = arith.constant 0 : i32
    %c0_i32_1 = arith.constant 0 : i32
    return %c0_i32, %c0_i32_0 : i32, i32
  }
  func.func @transform_4(%arg0: i32, %arg1: i32) -> (i32, i32) {
    %c0_i32 = arith.constant 0 : i32
    %c0_i32_0 = arith.constant 0 : i32
    %c0_i32_1 = arith.constant 0 : i32
    return %c0_i32, %c0_i32_0 : i32, i32
  }
  func.func @transform_5(%arg0: i32, %arg1: i32) -> (i32, i32) {
    %c0_i32 = arith.constant 0 : i32
    %c0_i32_0 = arith.constant 0 : i32
    %c0_i32_1 = arith.constant 0 : i32
    return %c0_i32, %c0_i32_0 : i32, i32
  }
  func.func @transform_6(%arg0: i32, %arg1: i32) -> (i32, i32) {
    %c0_i32 = arith.constant 0 : i32
    %c0_i32_0 = arith.constant 0 : i32
    return %c0_i32, %arg1 : i32, i32
  }
  func.func @transform_7(%arg0: i32, %arg1: i32) -> (i32, i32) {
    %c0_i32 = arith.constant 0 : i32
    %c0_i32_0 = arith.constant 0 : i32
    return %c0_i32, %arg1 : i32, i32
  }
  func.func @transform_8(%arg0: i32, %arg1: i32) -> (i32, i32, i32) {
    %c0_i32 = arith.constant 0 : i32
    %c0_i32_0 = arith.constant 0 : i32
    return %arg0, %c0_i32, %arg1 : i32, i32, i32
  }
}

module attributes {stable_mosaic.version = 11 : i64} {
  func.func @_lstm_kernel(%arg0: i32, %arg1: memref<8x8x32xf32, #tpu.memory_space<vmem>>, %arg2: memref<8x32xf32, #tpu.memory_space<vmem>>, %arg3: memref<8x32xf32, #tpu.memory_space<vmem>>, %arg4: memref<32x128xf32, #tpu.memory_space<vmem>>, %arg5: memref<32x128xf32, #tpu.memory_space<vmem>>, %arg6: memref<1x128xf32, #tpu.memory_space<vmem>>, %arg7: memref<8x8x32xf32, #tpu.memory_space<vmem>>, %arg8: memref<8x32xf32, #tpu.memory_space<vmem>>, %arg9: memref<8x32xf32, #tpu.memory_space<vmem>>, %arg10: memref<8x8x128xf32, #tpu.memory_space<vmem>>, %arg11: memref<8x8x32xf32, #tpu.memory_space<vmem>>) attributes {dimension_semantics = [#tpu.dimension_semantics<parallel>], iteration_bounds = array<i64: 1>, scalar_prefetch = 0 : i64, scratch_operands = 2 : i64, tpu.core_type = #tpu.core_type<tc>, window_params = [{transform_indices = @transform_0, window_bounds = array<i64: 8, 8, 32>}, {transform_indices = @transform_1, window_bounds = array<i64: 8, 32>}, {transform_indices = @transform_2, window_bounds = array<i64: 8, 32>}, {pipeline_mode = #tpu.pipeline_mode<synchronous>, transform_indices = @transform_3, window_bounds = array<i64: 32, 128>}, {pipeline_mode = #tpu.pipeline_mode<synchronous>, transform_indices = @transform_4, window_bounds = array<i64: 32, 128>}, {pipeline_mode = #tpu.pipeline_mode<synchronous>, transform_indices = @transform_5, window_bounds = array<i64: 1, 128>}, {transform_indices = @transform_6, window_bounds = array<i64: 8, 8, 32>}, {transform_indices = @transform_7, window_bounds = array<i64: 8, 32>}, {transform_indices = @transform_8, window_bounds = array<i64: 8, 32>}]} {
    %c0 = arith.constant 0 : index
    %c0_0 = arith.constant 0 : index
    %c0_1 = arith.constant 0 : index
    %0 = vector.load %arg1[%c0, %c0_0, %c0_1] : memref<8x8x32xf32, #tpu.memory_space<vmem>>, vector<8x8x32xf32>
    %1 = vector.shape_cast %0 : vector<8x8x32xf32> to vector<64x32xf32>
    %c0_2 = arith.constant 0 : index
    %c0_3 = arith.constant 0 : index
    %2 = vector.load %arg4[%c0_2, %c0_3] : memref<32x128xf32, #tpu.memory_space<vmem>>, vector<32x128xf32>
    %cst = arith.constant dense<0.000000e+00> : vector<64x128xf32>
    %3 = tpu.matmul %1, %2, %cst {dimension_numbers = #tpu.dot_dimension_numbers<[1], [0], [0], [1], [0, 0, 1, 1], [], []>} : vector<64x32xf32>, vector<32x128xf32>, vector<64x128xf32> -> vector<64x128xf32>
    %c0_4 = arith.constant 0 : index
    %c0_5 = arith.constant 0 : index
    %4 = vector.load %arg6[%c0_4, %c0_5] : memref<1x128xf32, #tpu.memory_space<vmem>>, vector<1x128xf32>
    %5 = vector.broadcast %4 : vector<1x128xf32> to vector<64x128xf32>
    %6 = arith.addf %3, %5 : vector<64x128xf32>
    %7 = vector.shape_cast %6 : vector<64x128xf32> to vector<8x8x128xf32>
    %8 = tpu.transpose %7, [1, 0, 2] : vector<8x8x128xf32> -> vector<8x8x128xf32>
    %c0_6 = arith.constant 0 : index
    %c0_7 = arith.constant 0 : index
    %c0_8 = arith.constant 0 : index
    %9 = vector.load %arg10[%c0_6, %c0_7, %c0_8] : memref<8x8x128xf32, #tpu.memory_space<vmem>>, vector<8x8x128xf32>
    tpu.vector_store %arg10[%c0_6, %c0_7, %c0_8], %8 {strides = array<i32>} : memref<8x8x128xf32, #tpu.memory_space<vmem>>, vector<8x8x128xf32>,
    %c0_9 = arith.constant 0 : index
    %c0_10 = arith.constant 0 : index
    %10 = vector.load %arg2[%c0_9, %c0_10] : memref<8x32xf32, #tpu.memory_space<vmem>>, vector<8x32xf32>
    %c0_11 = arith.constant 0 : index
    %c0_12 = arith.constant 0 : index
    %11 = vector.load %arg3[%c0_11, %c0_12] : memref<8x32xf32, #tpu.memory_space<vmem>>, vector<8x32xf32>
    %c0_i32 = arith.constant 0 : i32
    %12 = arith.index_cast %c0_i32 : i32 to index
    %c0_13 = arith.constant 0 : index
    %c0_14 = arith.constant 0 : index
    %13 = vector.load %arg10[%12, %c0_13, %c0_14] : memref<8x8x128xf32, #tpu.memory_space<vmem>>, vector<1x8x128xf32>
    %14 = vector.shape_cast %13 : vector<1x8x128xf32> to vector<8x128xf32>
    %c0_15 = arith.constant 0 : index
    %c0_16 = arith.constant 0 : index
    %15 = vector.load %arg5[%c0_15, %c0_16] : memref<32x128xf32, #tpu.memory_space<vmem>>, vector<32x128xf32>
    %cst_17 = arith.constant dense<0.000000e+00> : vector<8x128xf32>
    %16 = tpu.matmul %10, %15, %cst_17 {dimension_numbers = #tpu.dot_dimension_numbers<[1], [0], [0], [1], [0, 0, 1, 1], [], []>} : vector<8x32xf32>, vector<32x128xf32>, vector<8x128xf32> -> vector<8x128xf32>
    %17 = arith.addf %14, %16 : vector<8x128xf32>
    %18 = vector.extract_strided_slice %17 {offsets = [0, 0], sizes = [8, 32], strides = [1, 1]} : vector<8x128xf32> to vector<8x32xf32>
    %19 = arith.negf %18 : vector<8x32xf32>
    %20 = math.exp %19 : vector<8x32xf32>
    %cst_18 = arith.constant 1.000000e+00 : f32
    %21 = vector.broadcast %cst_18 : f32 to vector<8x32xf32>
    %22 = arith.addf %21, %20 : vector<8x32xf32>
    %23 = arith.divf %21, %22 : vector<8x32xf32>
    %24 = vector.extract_strided_slice %17 {offsets = [0, 32], sizes = [8, 32], strides = [1, 1]} : vector<8x128xf32> to vector<8x32xf32>
    %25 = arith.negf %24 : vector<8x32xf32>
    %26 = math.exp %25 : vector<8x32xf32>
    %cst_19 = arith.constant 1.000000e+00 : f32
    %27 = vector.broadcast %cst_19 : f32 to vector<8x32xf32>
    %28 = arith.addf %27, %26 : vector<8x32xf32>
    %29 = arith.divf %27, %28 : vector<8x32xf32>
    %30 = vector.extract_strided_slice %17 {offsets = [0, 64], sizes = [8, 32], strides = [1, 1]} : vector<8x128xf32> to vector<8x32xf32>
    %31 = math.tanh %30 : vector<8x32xf32>
    %32 = vector.extract_strided_slice %17 {offsets = [0, 96], sizes = [8, 32], strides = [1, 1]} : vector<8x128xf32> to vector<8x32xf32>
    %33 = arith.negf %32 : vector<8x32xf32>
    %34 = math.exp %33 : vector<8x32xf32>
    %cst_20 = arith.constant 1.000000e+00 : f32
    %35 = vector.broadcast %cst_20 : f32 to vector<8x32xf32>
    %36 = arith.addf %35, %34 : vector<8x32xf32>
    %37 = arith.divf %35, %36 : vector<8x32xf32>
    %38 = arith.mulf %29, %11 : vector<8x32xf32>
    %39 = arith.mulf %23, %31 : vector<8x32xf32>
    %40 = arith.addf %38, %39 : vector<8x32xf32>
    %41 = math.tanh %40 : vector<8x32xf32>
    %42 = arith.mulf %37, %41 : vector<8x32xf32>
    %43 = arith.index_cast %c0_i32 : i32 to index
    %c0_21 = arith.constant 0 : index
    %c0_22 = arith.constant 0 : index
    %44 = vector.load %arg11[%43, %c0_21, %c0_22] : memref<8x8x32xf32, #tpu.memory_space<vmem>>, vector<1x8x32xf32>
    %45 = vector.shape_cast %44 : vector<1x8x32xf32> to vector<8x32xf32>
    %46 = vector.shape_cast %42 : vector<8x32xf32> to vector<1x8x32xf32>
    tpu.vector_store %arg11[%43, %c0_21, %c0_22], %46 {strides = array<i32>} : memref<8x8x32xf32, #tpu.memory_space<vmem>>, vector<1x8x32xf32>,
    %c1_i32 = arith.constant 1 : i32
    %47 = arith.index_cast %c1_i32 : i32 to index
    %c0_23 = arith.constant 0 : index
    %c0_24 = arith.constant 0 : index
    %48 = vector.load %arg10[%47, %c0_23, %c0_24] : memref<8x8x128xf32, #tpu.memory_space<vmem>>, vector<1x8x128xf32>
    %49 = vector.shape_cast %48 : vector<1x8x128xf32> to vector<8x128xf32>
    %c0_25 = arith.constant 0 : index
    %c0_26 = arith.constant 0 : index
    %50 = vector.load %arg5[%c0_25, %c0_26] : memref<32x128xf32, #tpu.memory_space<vmem>>, vector<32x128xf32>
    %cst_27 = arith.constant dense<0.000000e+00> : vector<8x128xf32>
    %51 = tpu.matmul %42, %50, %cst_27 {dimension_numbers = #tpu.dot_dimension_numbers<[1], [0], [0], [1], [0, 0, 1, 1], [], []>} : vector<8x32xf32>, vector<32x128xf32>, vector<8x128xf32> -> vector<8x128xf32>
    %52 = arith.addf %49, %51 : vector<8x128xf32>
    %53 = vector.extract_strided_slice %52 {offsets = [0, 0], sizes = [8, 32], strides = [1, 1]} : vector<8x128xf32> to vector<8x32xf32>
    %54 = arith.negf %53 : vector<8x32xf32>
    %55 = math.exp %54 : vector<8x32xf32>
    %cst_28 = arith.constant 1.000000e+00 : f32
    %56 = vector.broadcast %cst_28 : f32 to vector<8x32xf32>
    %57 = arith.addf %56, %55 : vector<8x32xf32>
    %58 = arith.divf %56, %57 : vector<8x32xf32>
    %59 = vector.extract_strided_slice %52 {offsets = [0, 32], sizes = [8, 32], strides = [1, 1]} : vector<8x128xf32> to vector<8x32xf32>
    %60 = arith.negf %59 : vector<8x32xf32>
    %61 = math.exp %60 : vector<8x32xf32>
    %cst_29 = arith.constant 1.000000e+00 : f32
    %62 = vector.broadcast %cst_29 : f32 to vector<8x32xf32>
    %63 = arith.addf %62, %61 : vector<8x32xf32>
    %64 = arith.divf %62, %63 : vector<8x32xf32>
    %65 = vector.extract_strided_slice %52 {offsets = [0, 64], sizes = [8, 32], strides = [1, 1]} : vector<8x128xf32> to vector<8x32xf32>
    %66 = math.tanh %65 : vector<8x32xf32>
    %67 = vector.extract_strided_slice %52 {offsets = [0, 96], sizes = [8, 32], strides = [1, 1]} : vector<8x128xf32> to vector<8x32xf32>
    %68 = arith.negf %67 : vector<8x32xf32>
    %69 = math.exp %68 : vector<8x32xf32>
    %cst_30 = arith.constant 1.000000e+00 : f32
    %70 = vector.broadcast %cst_30 : f32 to vector<8x32xf32>
    %71 = arith.addf %70, %69 : vector<8x32xf32>
    %72 = arith.divf %70, %71 : vector<8x32xf32>
    %73 = arith.mulf %64, %40 : vector<8x32xf32>
    %74 = arith.mulf %58, %66 : vector<8x32xf32>
    %75 = arith.addf %73, %74 : vector<8x32xf32>
    %76 = math.tanh %75 : vector<8x32xf32>
    %77 = arith.mulf %72, %76 : vector<8x32xf32>
    %78 = arith.index_cast %c1_i32 : i32 to index
    %c0_31 = arith.constant 0 : index
    %c0_32 = arith.constant 0 : index
    %79 = vector.load %arg11[%78, %c0_31, %c0_32] : memref<8x8x32xf32, #tpu.memory_space<vmem>>, vector<1x8x32xf32>
    %80 = vector.shape_cast %79 : vector<1x8x32xf32> to vector<8x32xf32>
    %81 = vector.shape_cast %77 : vector<8x32xf32> to vector<1x8x32xf32>
    tpu.vector_store %arg11[%78, %c0_31, %c0_32], %81 {strides = array<i32>} : memref<8x8x32xf32, #tpu.memory_space<vmem>>, vector<1x8x32xf32>,
    %c2_i32 = arith.constant 2 : i32
    %82 = arith.index_cast %c2_i32 : i32 to index
    %c0_33 = arith.constant 0 : index
    %c0_34 = arith.constant 0 : index
    %83 = vector.load %arg10[%82, %c0_33, %c0_34] : memref<8x8x128xf32, #tpu.memory_space<vmem>>, vector<1x8x128xf32>
    %84 = vector.shape_cast %83 : vector<1x8x128xf32> to vector<8x128xf32>
    %c0_35 = arith.constant 0 : index
    %c0_36 = arith.constant 0 : index
    %85 = vector.load %arg5[%c0_35, %c0_36] : memref<32x128xf32, #tpu.memory_space<vmem>>, vector<32x128xf32>
    %cst_37 = arith.constant dense<0.000000e+00> : vector<8x128xf32>
    %86 = tpu.matmul %77, %85, %cst_37 {dimension_numbers = #tpu.dot_dimension_numbers<[1], [0], [0], [1], [0, 0, 1, 1], [], []>} : vector<8x32xf32>, vector<32x128xf32>, vector<8x128xf32> -> vector<8x128xf32>
    %87 = arith.addf %84, %86 : vector<8x128xf32>
    %88 = vector.extract_strided_slice %87 {offsets = [0, 0], sizes = [8, 32], strides = [1, 1]} : vector<8x128xf32> to vector<8x32xf32>
    %89 = arith.negf %88 : vector<8x32xf32>
    %90 = math.exp %89 : vector<8x32xf32>
    %cst_38 = arith.constant 1.000000e+00 : f32
    %91 = vector.broadcast %cst_38 : f32 to vector<8x32xf32>
    %92 = arith.addf %91, %90 : vector<8x32xf32>
    %93 = arith.divf %91, %92 : vector<8x32xf32>
    %94 = vector.extract_strided_slice %87 {offsets = [0, 32], sizes = [8, 32], strides = [1, 1]} : vector<8x128xf32> to vector<8x32xf32>
    %95 = arith.negf %94 : vector<8x32xf32>
    %96 = math.exp %95 : vector<8x32xf32>
    %cst_39 = arith.constant 1.000000e+00 : f32
    %97 = vector.broadcast %cst_39 : f32 to vector<8x32xf32>
    %98 = arith.addf %97, %96 : vector<8x32xf32>
    %99 = arith.divf %97, %98 : vector<8x32xf32>
    %100 = vector.extract_strided_slice %87 {offsets = [0, 64], sizes = [8, 32], strides = [1, 1]} : vector<8x128xf32> to vector<8x32xf32>
    %101 = math.tanh %100 : vector<8x32xf32>
    %102 = vector.extract_strided_slice %87 {offsets = [0, 96], sizes = [8, 32], strides = [1, 1]} : vector<8x128xf32> to vector<8x32xf32>
    %103 = arith.negf %102 : vector<8x32xf32>
    %104 = math.exp %103 : vector<8x32xf32>
    %cst_40 = arith.constant 1.000000e+00 : f32
    %105 = vector.broadcast %cst_40 : f32 to vector<8x32xf32>
    %106 = arith.addf %105, %104 : vector<8x32xf32>
    %107 = arith.divf %105, %106 : vector<8x32xf32>
    %108 = arith.mulf %99, %75 : vector<8x32xf32>
    %109 = arith.mulf %93, %101 : vector<8x32xf32>
    %110 = arith.addf %108, %109 : vector<8x32xf32>
    %111 = math.tanh %110 : vector<8x32xf32>
    %112 = arith.mulf %107, %111 : vector<8x32xf32>
    %113 = arith.index_cast %c2_i32 : i32 to index
    %c0_41 = arith.constant 0 : index
    %c0_42 = arith.constant 0 : index
    %114 = vector.load %arg11[%113, %c0_41, %c0_42] : memref<8x8x32xf32, #tpu.memory_space<vmem>>, vector<1x8x32xf32>
    %115 = vector.shape_cast %114 : vector<1x8x32xf32> to vector<8x32xf32>
    %116 = vector.shape_cast %112 : vector<8x32xf32> to vector<1x8x32xf32>
    tpu.vector_store %arg11[%113, %c0_41, %c0_42], %116 {strides = array<i32>} : memref<8x8x32xf32, #tpu.memory_space<vmem>>, vector<1x8x32xf32>,
    %c3_i32 = arith.constant 3 : i32
    %117 = arith.index_cast %c3_i32 : i32 to index
    %c0_43 = arith.constant 0 : index
    %c0_44 = arith.constant 0 : index
    %118 = vector.load %arg10[%117, %c0_43, %c0_44] : memref<8x8x128xf32, #tpu.memory_space<vmem>>, vector<1x8x128xf32>
    %119 = vector.shape_cast %118 : vector<1x8x128xf32> to vector<8x128xf32>
    %c0_45 = arith.constant 0 : index
    %c0_46 = arith.constant 0 : index
    %120 = vector.load %arg5[%c0_45, %c0_46] : memref<32x128xf32, #tpu.memory_space<vmem>>, vector<32x128xf32>
    %cst_47 = arith.constant dense<0.000000e+00> : vector<8x128xf32>
    %121 = tpu.matmul %112, %120, %cst_47 {dimension_numbers = #tpu.dot_dimension_numbers<[1], [0], [0], [1], [0, 0, 1, 1], [], []>} : vector<8x32xf32>, vector<32x128xf32>, vector<8x128xf32> -> vector<8x128xf32>
    %122 = arith.addf %119, %121 : vector<8x128xf32>
    %123 = vector.extract_strided_slice %122 {offsets = [0, 0], sizes = [8, 32], strides = [1, 1]} : vector<8x128xf32> to vector<8x32xf32>
    %124 = arith.negf %123 : vector<8x32xf32>
    %125 = math.exp %124 : vector<8x32xf32>
    %cst_48 = arith.constant 1.000000e+00 : f32
    %126 = vector.broadcast %cst_48 : f32 to vector<8x32xf32>
    %127 = arith.addf %126, %125 : vector<8x32xf32>
    %128 = arith.divf %126, %127 : vector<8x32xf32>
    %129 = vector.extract_strided_slice %122 {offsets = [0, 32], sizes = [8, 32], strides = [1, 1]} : vector<8x128xf32> to vector<8x32xf32>
    %130 = arith.negf %129 : vector<8x32xf32>
    %131 = math.exp %130 : vector<8x32xf32>
    %cst_49 = arith.constant 1.000000e+00 : f32
    %132 = vector.broadcast %cst_49 : f32 to vector<8x32xf32>
    %133 = arith.addf %132, %131 : vector<8x32xf32>
    %134 = arith.divf %132, %133 : vector<8x32xf32>
    %135 = vector.extract_strided_slice %122 {offsets = [0, 64], sizes = [8, 32], strides = [1, 1]} : vector<8x128xf32> to vector<8x32xf32>
    %136 = math.tanh %135 : vector<8x32xf32>
    %137 = vector.extract_strided_slice %122 {offsets = [0, 96], sizes = [8, 32], strides = [1, 1]} : vector<8x128xf32> to vector<8x32xf32>
    %138 = arith.negf %137 : vector<8x32xf32>
    %139 = math.exp %138 : vector<8x32xf32>
    %cst_50 = arith.constant 1.000000e+00 : f32
    %140 = vector.broadcast %cst_50 : f32 to vector<8x32xf32>
    %141 = arith.addf %140, %139 : vector<8x32xf32>
    %142 = arith.divf %140, %141 : vector<8x32xf32>
    %143 = arith.mulf %134, %110 : vector<8x32xf32>
    %144 = arith.mulf %128, %136 : vector<8x32xf32>
    %145 = arith.addf %143, %144 : vector<8x32xf32>
    %146 = math.tanh %145 : vector<8x32xf32>
    %147 = arith.mulf %142, %146 : vector<8x32xf32>
    %148 = arith.index_cast %c3_i32 : i32 to index
    %c0_51 = arith.constant 0 : index
    %c0_52 = arith.constant 0 : index
    %149 = vector.load %arg11[%148, %c0_51, %c0_52] : memref<8x8x32xf32, #tpu.memory_space<vmem>>, vector<1x8x32xf32>
    %150 = vector.shape_cast %149 : vector<1x8x32xf32> to vector<8x32xf32>
    %151 = vector.shape_cast %147 : vector<8x32xf32> to vector<1x8x32xf32>
    tpu.vector_store %arg11[%148, %c0_51, %c0_52], %151 {strides = array<i32>} : memref<8x8x32xf32, #tpu.memory_space<vmem>>, vector<1x8x32xf32>,
    %c4_i32 = arith.constant 4 : i32
    %152 = arith.index_cast %c4_i32 : i32 to index
    %c0_53 = arith.constant 0 : index
    %c0_54 = arith.constant 0 : index
    %153 = vector.load %arg10[%152, %c0_53, %c0_54] : memref<8x8x128xf32, #tpu.memory_space<vmem>>, vector<1x8x128xf32>
    %154 = vector.shape_cast %153 : vector<1x8x128xf32> to vector<8x128xf32>
    %c0_55 = arith.constant 0 : index
    %c0_56 = arith.constant 0 : index
    %155 = vector.load %arg5[%c0_55, %c0_56] : memref<32x128xf32, #tpu.memory_space<vmem>>, vector<32x128xf32>
    %cst_57 = arith.constant dense<0.000000e+00> : vector<8x128xf32>
    %156 = tpu.matmul %147, %155, %cst_57 {dimension_numbers = #tpu.dot_dimension_numbers<[1], [0], [0], [1], [0, 0, 1, 1], [], []>} : vector<8x32xf32>, vector<32x128xf32>, vector<8x128xf32> -> vector<8x128xf32>
    %157 = arith.addf %154, %156 : vector<8x128xf32>
    %158 = vector.extract_strided_slice %157 {offsets = [0, 0], sizes = [8, 32], strides = [1, 1]} : vector<8x128xf32> to vector<8x32xf32>
    %159 = arith.negf %158 : vector<8x32xf32>
    %160 = math.exp %159 : vector<8x32xf32>
    %cst_58 = arith.constant 1.000000e+00 : f32
    %161 = vector.broadcast %cst_58 : f32 to vector<8x32xf32>
    %162 = arith.addf %161, %160 : vector<8x32xf32>
    %163 = arith.divf %161, %162 : vector<8x32xf32>
    %164 = vector.extract_strided_slice %157 {offsets = [0, 32], sizes = [8, 32], strides = [1, 1]} : vector<8x128xf32> to vector<8x32xf32>
    %165 = arith.negf %164 : vector<8x32xf32>
    %166 = math.exp %165 : vector<8x32xf32>
    %cst_59 = arith.constant 1.000000e+00 : f32
    %167 = vector.broadcast %cst_59 : f32 to vector<8x32xf32>
    %168 = arith.addf %167, %166 : vector<8x32xf32>
    %169 = arith.divf %167, %168 : vector<8x32xf32>
    %170 = vector.extract_strided_slice %157 {offsets = [0, 64], sizes = [8, 32], strides = [1, 1]} : vector<8x128xf32> to vector<8x32xf32>
    %171 = math.tanh %170 : vector<8x32xf32>
    %172 = vector.extract_strided_slice %157 {offsets = [0, 96], sizes = [8, 32], strides = [1, 1]} : vector<8x128xf32> to vector<8x32xf32>
    %173 = arith.negf %172 : vector<8x32xf32>
    %174 = math.exp %173 : vector<8x32xf32>
    %cst_60 = arith.constant 1.000000e+00 : f32
    %175 = vector.broadcast %cst_60 : f32 to vector<8x32xf32>
    %176 = arith.addf %175, %174 : vector<8x32xf32>
    %177 = arith.divf %175, %176 : vector<8x32xf32>
    %178 = arith.mulf %169, %145 : vector<8x32xf32>
    %179 = arith.mulf %163, %171 : vector<8x32xf32>
    %180 = arith.addf %178, %179 : vector<8x32xf32>
    %181 = math.tanh %180 : vector<8x32xf32>
    %182 = arith.mulf %177, %181 : vector<8x32xf32>
    %183 = arith.index_cast %c4_i32 : i32 to index
    %c0_61 = arith.constant 0 : index
    %c0_62 = arith.constant 0 : index
    %184 = vector.load %arg11[%183, %c0_61, %c0_62] : memref<8x8x32xf32, #tpu.memory_space<vmem>>, vector<1x8x32xf32>
    %185 = vector.shape_cast %184 : vector<1x8x32xf32> to vector<8x32xf32>
    %186 = vector.shape_cast %182 : vector<8x32xf32> to vector<1x8x32xf32>
    tpu.vector_store %arg11[%183, %c0_61, %c0_62], %186 {strides = array<i32>} : memref<8x8x32xf32, #tpu.memory_space<vmem>>, vector<1x8x32xf32>,
    %c5_i32 = arith.constant 5 : i32
    %187 = arith.index_cast %c5_i32 : i32 to index
    %c0_63 = arith.constant 0 : index
    %c0_64 = arith.constant 0 : index
    %188 = vector.load %arg10[%187, %c0_63, %c0_64] : memref<8x8x128xf32, #tpu.memory_space<vmem>>, vector<1x8x128xf32>
    %189 = vector.shape_cast %188 : vector<1x8x128xf32> to vector<8x128xf32>
    %c0_65 = arith.constant 0 : index
    %c0_66 = arith.constant 0 : index
    %190 = vector.load %arg5[%c0_65, %c0_66] : memref<32x128xf32, #tpu.memory_space<vmem>>, vector<32x128xf32>
    %cst_67 = arith.constant dense<0.000000e+00> : vector<8x128xf32>
    %191 = tpu.matmul %182, %190, %cst_67 {dimension_numbers = #tpu.dot_dimension_numbers<[1], [0], [0], [1], [0, 0, 1, 1], [], []>} : vector<8x32xf32>, vector<32x128xf32>, vector<8x128xf32> -> vector<8x128xf32>
    %192 = arith.addf %189, %191 : vector<8x128xf32>
    %193 = vector.extract_strided_slice %192 {offsets = [0, 0], sizes = [8, 32], strides = [1, 1]} : vector<8x128xf32> to vector<8x32xf32>
    %194 = arith.negf %193 : vector<8x32xf32>
    %195 = math.exp %194 : vector<8x32xf32>
    %cst_68 = arith.constant 1.000000e+00 : f32
    %196 = vector.broadcast %cst_68 : f32 to vector<8x32xf32>
    %197 = arith.addf %196, %195 : vector<8x32xf32>
    %198 = arith.divf %196, %197 : vector<8x32xf32>
    %199 = vector.extract_strided_slice %192 {offsets = [0, 32], sizes = [8, 32], strides = [1, 1]} : vector<8x128xf32> to vector<8x32xf32>
    %200 = arith.negf %199 : vector<8x32xf32>
    %201 = math.exp %200 : vector<8x32xf32>
    %cst_69 = arith.constant 1.000000e+00 : f32
    %202 = vector.broadcast %cst_69 : f32 to vector<8x32xf32>
    %203 = arith.addf %202, %201 : vector<8x32xf32>
    %204 = arith.divf %202, %203 : vector<8x32xf32>
    %205 = vector.extract_strided_slice %192 {offsets = [0, 64], sizes = [8, 32], strides = [1, 1]} : vector<8x128xf32> to vector<8x32xf32>
    %206 = math.tanh %205 : vector<8x32xf32>
    %207 = vector.extract_strided_slice %192 {offsets = [0, 96], sizes = [8, 32], strides = [1, 1]} : vector<8x128xf32> to vector<8x32xf32>
    %208 = arith.negf %207 : vector<8x32xf32>
    %209 = math.exp %208 : vector<8x32xf32>
    %cst_70 = arith.constant 1.000000e+00 : f32
    %210 = vector.broadcast %cst_70 : f32 to vector<8x32xf32>
    %211 = arith.addf %210, %209 : vector<8x32xf32>
    %212 = arith.divf %210, %211 : vector<8x32xf32>
    %213 = arith.mulf %204, %180 : vector<8x32xf32>
    %214 = arith.mulf %198, %206 : vector<8x32xf32>
    %215 = arith.addf %213, %214 : vector<8x32xf32>
    %216 = math.tanh %215 : vector<8x32xf32>
    %217 = arith.mulf %212, %216 : vector<8x32xf32>
    %218 = arith.index_cast %c5_i32 : i32 to index
    %c0_71 = arith.constant 0 : index
    %c0_72 = arith.constant 0 : index
    %219 = vector.load %arg11[%218, %c0_71, %c0_72] : memref<8x8x32xf32, #tpu.memory_space<vmem>>, vector<1x8x32xf32>
    %220 = vector.shape_cast %219 : vector<1x8x32xf32> to vector<8x32xf32>
    %221 = vector.shape_cast %217 : vector<8x32xf32> to vector<1x8x32xf32>
    tpu.vector_store %arg11[%218, %c0_71, %c0_72], %221 {strides = array<i32>} : memref<8x8x32xf32, #tpu.memory_space<vmem>>, vector<1x8x32xf32>,
    %c6_i32 = arith.constant 6 : i32
    %222 = arith.index_cast %c6_i32 : i32 to index
    %c0_73 = arith.constant 0 : index
    %c0_74 = arith.constant 0 : index
    %223 = vector.load %arg10[%222, %c0_73, %c0_74] : memref<8x8x128xf32, #tpu.memory_space<vmem>>, vector<1x8x128xf32>
    %224 = vector.shape_cast %223 : vector<1x8x128xf32> to vector<8x128xf32>
    %c0_75 = arith.constant 0 : index
    %c0_76 = arith.constant 0 : index
    %225 = vector.load %arg5[%c0_75, %c0_76] : memref<32x128xf32, #tpu.memory_space<vmem>>, vector<32x128xf32>
    %cst_77 = arith.constant dense<0.000000e+00> : vector<8x128xf32>
    %226 = tpu.matmul %217, %225, %cst_77 {dimension_numbers = #tpu.dot_dimension_numbers<[1], [0], [0], [1], [0, 0, 1, 1], [], []>} : vector<8x32xf32>, vector<32x128xf32>, vector<8x128xf32> -> vector<8x128xf32>
    %227 = arith.addf %224, %226 : vector<8x128xf32>
    %228 = vector.extract_strided_slice %227 {offsets = [0, 0], sizes = [8, 32], strides = [1, 1]} : vector<8x128xf32> to vector<8x32xf32>
    %229 = arith.negf %228 : vector<8x32xf32>
    %230 = math.exp %229 : vector<8x32xf32>
    %cst_78 = arith.constant 1.000000e+00 : f32
    %231 = vector.broadcast %cst_78 : f32 to vector<8x32xf32>
    %232 = arith.addf %231, %230 : vector<8x32xf32>
    %233 = arith.divf %231, %232 : vector<8x32xf32>
    %234 = vector.extract_strided_slice %227 {offsets = [0, 32], sizes = [8, 32], strides = [1, 1]} : vector<8x128xf32> to vector<8x32xf32>
    %235 = arith.negf %234 : vector<8x32xf32>
    %236 = math.exp %235 : vector<8x32xf32>
    %cst_79 = arith.constant 1.000000e+00 : f32
    %237 = vector.broadcast %cst_79 : f32 to vector<8x32xf32>
    %238 = arith.addf %237, %236 : vector<8x32xf32>
    %239 = arith.divf %237, %238 : vector<8x32xf32>
    %240 = vector.extract_strided_slice %227 {offsets = [0, 64], sizes = [8, 32], strides = [1, 1]} : vector<8x128xf32> to vector<8x32xf32>
    %241 = math.tanh %240 : vector<8x32xf32>
    %242 = vector.extract_strided_slice %227 {offsets = [0, 96], sizes = [8, 32], strides = [1, 1]} : vector<8x128xf32> to vector<8x32xf32>
    %243 = arith.negf %242 : vector<8x32xf32>
    %244 = math.exp %243 : vector<8x32xf32>
    %cst_80 = arith.constant 1.000000e+00 : f32
    %245 = vector.broadcast %cst_80 : f32 to vector<8x32xf32>
    %246 = arith.addf %245, %244 : vector<8x32xf32>
    %247 = arith.divf %245, %246 : vector<8x32xf32>
    %248 = arith.mulf %239, %215 : vector<8x32xf32>
    %249 = arith.mulf %233, %241 : vector<8x32xf32>
    %250 = arith.addf %248, %249 : vector<8x32xf32>
    %251 = math.tanh %250 : vector<8x32xf32>
    %252 = arith.mulf %247, %251 : vector<8x32xf32>
    %253 = arith.index_cast %c6_i32 : i32 to index
    %c0_81 = arith.constant 0 : index
    %c0_82 = arith.constant 0 : index
    %254 = vector.load %arg11[%253, %c0_81, %c0_82] : memref<8x8x32xf32, #tpu.memory_space<vmem>>, vector<1x8x32xf32>
    %255 = vector.shape_cast %254 : vector<1x8x32xf32> to vector<8x32xf32>
    %256 = vector.shape_cast %252 : vector<8x32xf32> to vector<1x8x32xf32>
    tpu.vector_store %arg11[%253, %c0_81, %c0_82], %256 {strides = array<i32>} : memref<8x8x32xf32, #tpu.memory_space<vmem>>, vector<1x8x32xf32>,
    %c7_i32 = arith.constant 7 : i32
    %257 = arith.index_cast %c7_i32 : i32 to index
    %c0_83 = arith.constant 0 : index
    %c0_84 = arith.constant 0 : index
    %258 = vector.load %arg10[%257, %c0_83, %c0_84] : memref<8x8x128xf32, #tpu.memory_space<vmem>>, vector<1x8x128xf32>
    %259 = vector.shape_cast %258 : vector<1x8x128xf32> to vector<8x128xf32>
    %c0_85 = arith.constant 0 : index
    %c0_86 = arith.constant 0 : index
    %260 = vector.load %arg5[%c0_85, %c0_86] : memref<32x128xf32, #tpu.memory_space<vmem>>, vector<32x128xf32>
    %cst_87 = arith.constant dense<0.000000e+00> : vector<8x128xf32>
    %261 = tpu.matmul %252, %260, %cst_87 {dimension_numbers = #tpu.dot_dimension_numbers<[1], [0], [0], [1], [0, 0, 1, 1], [], []>} : vector<8x32xf32>, vector<32x128xf32>, vector<8x128xf32> -> vector<8x128xf32>
    %262 = arith.addf %259, %261 : vector<8x128xf32>
    %263 = vector.extract_strided_slice %262 {offsets = [0, 0], sizes = [8, 32], strides = [1, 1]} : vector<8x128xf32> to vector<8x32xf32>
    %264 = arith.negf %263 : vector<8x32xf32>
    %265 = math.exp %264 : vector<8x32xf32>
    %cst_88 = arith.constant 1.000000e+00 : f32
    %266 = vector.broadcast %cst_88 : f32 to vector<8x32xf32>
    %267 = arith.addf %266, %265 : vector<8x32xf32>
    %268 = arith.divf %266, %267 : vector<8x32xf32>
    %269 = vector.extract_strided_slice %262 {offsets = [0, 32], sizes = [8, 32], strides = [1, 1]} : vector<8x128xf32> to vector<8x32xf32>
    %270 = arith.negf %269 : vector<8x32xf32>
    %271 = math.exp %270 : vector<8x32xf32>
    %cst_89 = arith.constant 1.000000e+00 : f32
    %272 = vector.broadcast %cst_89 : f32 to vector<8x32xf32>
    %273 = arith.addf %272, %271 : vector<8x32xf32>
    %274 = arith.divf %272, %273 : vector<8x32xf32>
    %275 = vector.extract_strided_slice %262 {offsets = [0, 64], sizes = [8, 32], strides = [1, 1]} : vector<8x128xf32> to vector<8x32xf32>
    %276 = math.tanh %275 : vector<8x32xf32>
    %277 = vector.extract_strided_slice %262 {offsets = [0, 96], sizes = [8, 32], strides = [1, 1]} : vector<8x128xf32> to vector<8x32xf32>
    %278 = arith.negf %277 : vector<8x32xf32>
    %279 = math.exp %278 : vector<8x32xf32>
    %cst_90 = arith.constant 1.000000e+00 : f32
    %280 = vector.broadcast %cst_90 : f32 to vector<8x32xf32>
    %281 = arith.addf %280, %279 : vector<8x32xf32>
    %282 = arith.divf %280, %281 : vector<8x32xf32>
    %283 = arith.mulf %274, %250 : vector<8x32xf32>
    %284 = arith.mulf %268, %276 : vector<8x32xf32>
    %285 = arith.addf %283, %284 : vector<8x32xf32>
    %286 = math.tanh %285 : vector<8x32xf32>
    %287 = arith.mulf %282, %286 : vector<8x32xf32>
    %288 = arith.index_cast %c7_i32 : i32 to index
    %c0_91 = arith.constant 0 : index
    %c0_92 = arith.constant 0 : index
    %289 = vector.load %arg11[%288, %c0_91, %c0_92] : memref<8x8x32xf32, #tpu.memory_space<vmem>>, vector<1x8x32xf32>
    %290 = vector.shape_cast %289 : vector<1x8x32xf32> to vector<8x32xf32>
    %291 = vector.shape_cast %287 : vector<8x32xf32> to vector<1x8x32xf32>
    tpu.vector_store %arg11[%288, %c0_91, %c0_92], %291 {strides = array<i32>} : memref<8x8x32xf32, #tpu.memory_space<vmem>>, vector<1x8x32xf32>,
    %c8_i32 = arith.constant 8 : i32
    %c0_93 = arith.constant 0 : index
    %c0_94 = arith.constant 0 : index
    %c0_95 = arith.constant 0 : index
    %292 = vector.load %arg11[%c0_93, %c0_94, %c0_95] : memref<8x8x32xf32, #tpu.memory_space<vmem>>, vector<8x8x32xf32>
    %293 = tpu.transpose %292, [1, 0, 2] : vector<8x8x32xf32> -> vector<8x8x32xf32>
    %c0_96 = arith.constant 0 : index
    %c0_97 = arith.constant 0 : index
    %c0_98 = arith.constant 0 : index
    %294 = vector.load %arg7[%c0_96, %c0_97, %c0_98] : memref<8x8x32xf32, #tpu.memory_space<vmem>>, vector<8x8x32xf32>
    tpu.vector_store %arg7[%c0_96, %c0_97, %c0_98], %293 {strides = array<i32>} : memref<8x8x32xf32, #tpu.memory_space<vmem>>, vector<8x8x32xf32>,
    %c0_99 = arith.constant 0 : index
    %c0_100 = arith.constant 0 : index
    %295 = vector.load %arg8[%c0_99, %c0_100] : memref<8x32xf32, #tpu.memory_space<vmem>>, vector<8x32xf32>
    tpu.vector_store %arg8[%c0_99, %c0_100], %287 {strides = array<i32>} : memref<8x32xf32, #tpu.memory_space<vmem>>, vector<8x32xf32>,
    %c0_101 = arith.constant 0 : index
    %c0_102 = arith.constant 0 : index
    %296 = vector.load %arg9[%c0_101, %c0_102] : memref<8x32xf32, #tpu.memory_space<vmem>>, vector<8x32xf32>
    tpu.vector_store %arg9[%c0_101, %c0_102], %285 {strides = array<i32>} : memref<8x32xf32, #tpu.memory_space<vmem>>, vector<8x32xf32>,
    return
  }
  func.func @transform_0(%arg0: i32) -> (i32, i32, i32) {
    %c0_i32 = arith.constant 0 : i32
    %c0_i32_0 = arith.constant 0 : i32
    %c0_i32_1 = arith.constant 0 : i32
    return %arg0, %c0_i32, %c0_i32_0 : i32, i32, i32
  }
  func.func @transform_1(%arg0: i32) -> (i32, i32) {
    %c0_i32 = arith.constant 0 : i32
    %c0_i32_0 = arith.constant 0 : i32
    return %arg0, %c0_i32 : i32, i32
  }
  func.func @transform_2(%arg0: i32) -> (i32, i32) {
    %c0_i32 = arith.constant 0 : i32
    %c0_i32_0 = arith.constant 0 : i32
    return %arg0, %c0_i32 : i32, i32
  }
  func.func @transform_3(%arg0: i32) -> (i32, i32) {
    %c0_i32 = arith.constant 0 : i32
    %c0_i32_0 = arith.constant 0 : i32
    %c0_i32_1 = arith.constant 0 : i32
    return %c0_i32, %c0_i32_0 : i32, i32
  }
  func.func @transform_4(%arg0: i32) -> (i32, i32) {
    %c0_i32 = arith.constant 0 : i32
    %c0_i32_0 = arith.constant 0 : i32
    %c0_i32_1 = arith.constant 0 : i32
    return %c0_i32, %c0_i32_0 : i32, i32
  }
  func.func @transform_5(%arg0: i32) -> (i32, i32) {
    %c0_i32 = arith.constant 0 : i32
    %c0_i32_0 = arith.constant 0 : i32
    %c0_i32_1 = arith.constant 0 : i32
    return %c0_i32, %c0_i32_0 : i32, i32
  }
  func.func @transform_6(%arg0: i32) -> (i32, i32, i32) {
    %c0_i32 = arith.constant 0 : i32
    %c0_i32_0 = arith.constant 0 : i32
    %c0_i32_1 = arith.constant 0 : i32
    return %arg0, %c0_i32, %c0_i32_0 : i32, i32, i32
  }
  func.func @transform_7(%arg0: i32) -> (i32, i32) {
    %c0_i32 = arith.constant 0 : i32
    %c0_i32_0 = arith.constant 0 : i32
    return %arg0, %c0_i32 : i32, i32
  }
  func.func @transform_8(%arg0: i32) -> (i32, i32) {
    %c0_i32 = arith.constant 0 : i32
    %c0_i32_0 = arith.constant 0 : i32
    return %arg0, %c0_i32 : i32, i32
  }
}

</mosaic_0001>

<bundles_post_ra>
// kernel: speaker_decoder_forward.3
= control target key start
LH: loop header
LB: loop body
LE: loop exit
PB: predicated region body
PF: predicated region fallthrough
CT: control target
= control target key end

     0   :  { %vm53_vm0 = vcmask 261120   ;;  %vm375_vm1 = vcmask 64512   ;;  %s1425_s3 = inlined_call_operand.vmem [shape: f32[32,32], index: 3, kind: input, shape index: {}]   ;;  %s1426_s0 = inlined_call_operand.vmem [shape: f32[8,8,32], index: 0, kind: input, shape index: {}]   ;;  %s1427_s1 = inlined_call_operand.vmem [shape: f32[8,8,32], index: 1, kind: input, shape index: {}]   ;;  %s1428_s2 = inlined_call_operand.vmem [shape: f32[8,1,8], index: 2, kind: input, shape index: {}]   ;;  %s1429_s5 = inlined_call_operand.vmem [shape: f32[32,32], index: 5, kind: input, shape index: {}]   ;;  %s1430_s4 = inlined_call_operand.vmem [shape: f32[32,32], index: 4, kind: input, shape index: {}]   ;;  %s1431_s7 = inlined_call_operand.vmem [shape: f32[1,128], index: 7, kind: input, shape index: {}]   ;;  %s1432_s6 = inlined_call_operand.vmem [shape: f32[32,128], index: 6, kind: input, shape index: {}]   ;;  %s1433_s8 = inlined_call_operand.vmem [shape: f32[8,8,128], index: 8, kind: output, shape index: {}]  }
   0x1   :  { %v52_v0 = vld [vmem:[%s1425_s3 + $0x18] sm:$0xff]  ;;  %v51_v1 = vld [vmem:[%s1425_s3 + $0x10] sm:$0xff]  ;;  %v50_v2 = vld [vmem:[%s1425_s3 + $0x8] sm:$0xff] }
   0x2   :  { %90 = vmatpush.msra.mxu0 %v52_v0  ;;  %v49_v3 = vld [vmem:[%s1425_s3] sm:$0xff]  ;;  %v1148_v5 = vld [vmem:[%s1426_s0 + $0x8] sm:$0xff]  ;;  %v1155_v6 = vld [vmem:[%s1426_s0 + $0x10] sm:$0xff] }
   0x3   :  { %v1141_v4 = vld [vmem:[%s1426_s0] sm:$0xff]  ;;  %v1162_v7 = vld [vmem:[%s1426_s0 + $0x18] sm:$0xff]  ;;  %v1180_v10 = vld [vmem:[%s1426_s0 + $0x28] sm:$0xff] }
   0x4   :  { %91 = vmatpush.msra.mxu0 %v51_v1  ;;  %v41_v8 = vld [vmem:[%s1427_s1] sm:$0xff]  ;;  %v1187_v11 = vld [vmem:[%s1426_s0 + $0x30] sm:$0xff]  ;;  %v1194_v12 = vld [vmem:[%s1426_s0 + $0x38] sm:$0xff] }
   0x5   :  { %v1173_v9 = vld [vmem:[%s1426_s0 + $0x20] sm:$0xff]  ;;  %v42_v13 = vld [vmem:[%s1427_s1 + $0x8] sm:$0xff]  ;;  %v43_v15 = vld [vmem:[%s1427_s1 + $0x10] sm:$0xff] }
   0x6   :  { %92 = vmatpush.msra.mxu0 %v50_v2  ;;  %v45_v14 = vld [vmem:[%s1427_s1 + $0x20] sm:$0xff]  ;;  %v46_v17 = vld [vmem:[%s1427_s1 + $0x28] sm:$0xff]  ;;  %v44_v18 = vld [vmem:[%s1427_s1 + $0x18] sm:$0xff] }
   0x7   :  { %992 = vmatpush.xpose.msk.msra.mxu2 %vm53_vm0, %v45_v14  ;;  %994 = vmatpush.xpose.msk.msra.mxu3 %vm53_vm0, %v46_v17  ;;  %v1222_v20 = vld [vmem:[%s1427_s1 + $0x30] sm:$0xff]  ;;  %v1231_v22 = vld [vmem:[%s1427_s1 + $0x38] sm:$0xff]  ;;  %v327_v28 = vld [vmem:[%s1428_s2] sm:$0x1] }
   0x8   :  { %93 = vmatpush.msra.mxu0 %v49_v3  ;;  %996 = vmatpush.xpose.msk.msra.mxu1 %vm53_vm0, %v1222_v20  ;;  %v335_v29 = vmul.f32 1e+30, %v327_v28  ;;  %v328_v31 = vld [vmem:[%s1428_s2 + $0x1] sm:$0x1]  ;;  %v329_v37 = vld [vmem:[%s1428_s2 + $0x2] sm:$0x1] }
   0x9   :  { %976 = vmatmul.msk.f32.vlgmr.msra.gmra.mxu0 %vm53_vm0, %v1141_v4  ;;  %v336_v34 = vmul.f32 1e+30, %v328_v31  ;;  %v337_v40 = vmul.f32 1e+30, %v329_v37  ;;  %v330_v43 = vld [vmem:[%s1428_s2 + $0x3] sm:$0x1] }
   0xa   :  { %984 = vmatpush.xpose.msk.msrb.mxu0 %vm53_vm0, %v41_v8  ;;  %v351_v30 = vperm.slane %v335_v29, 0  ;;  %v338_v46 = vmul.f32 1e+30, %v330_v43  ;;  %v331_v52 = vld [vmem:[%s1428_s2 + $0x4] sm:$0x1] }
   0xb   :  { %586 = vmatpush.msrb.mxu3 %v41_v8  ;;  %998 = vmatpush.xpose.msk.msrb.mxu2 %vm53_vm0, %v1231_v22  ;;  %v352_v36 = vperm.slane %v336_v34, 0  ;;  %v353_v42 = vperm.slane %v337_v40, 0  ;;  %v339_v53 = vmul.f32 1e+30, %v331_v52  ;;  %v332_v55 = vld [vmem:[%s1428_s2 + $0x5] sm:$0x1] }
   0xc   :  { %609 = vmatpush.msrb.mxu1 %v42_v13  ;;  %v354_v48 = vperm.slane %v338_v46, 0  ;;  %v333_v57 = vld [vmem:[%s1428_s2 + $0x6] sm:$0x1]  ;;  %v340_v59 = vmul.f32 1e+30, %v332_v55 }
   0xd   :  { %v355_v54 = vperm.slane %v339_v53, 0  ;;  %v341_v61 = vmul.f32 1e+30, %v333_v57 }
   0xe   :  { %986 = vmatpush.xpose.msk.msra.mxu0 %vm53_vm0, %v42_v13  ;;  %v356_v62 = vperm.slane %v340_v59, 0 }
   0xf   :  { %v357_v63 = vperm.slane %v341_v61, 0 }
  0x11   :  { %977 = vmatmul.msk.f32.gmra.mxu0 %vm53_vm0, %v1148_v5 }
  0x19   :  { %978 = vmatmul.msk.f32.gmra.mxu0 %vm53_vm0, %v1155_v6 }
  0x21   :  { %979 = vmatmul.msk.f32.gmra.mxu0 %vm53_vm0, %v1162_v7 }
  0x29   :  { %980 = vmatmul.msk.f32.gmra.mxu0 %vm53_vm0, %v1173_v9 }
  0x31   :  { %981 = vmatmul.msk.f32.gmra.mxu0 %vm53_vm0, %v1180_v10 }
  0x39   :  { %982 = vmatmul.msk.f32.gmra.mxu0 %vm53_vm0, %v1187_v11 }
  0x41   :  { %983 = vmatmul.msk.f32.gmra.mxu0 %vm53_vm0, %v1194_v12 }
  0x86   :  { %v95_v16 = vpop.f32.mrf.mxu0 }
  0x87   :  { %985 = vmatmul.msk.f32.vlgmr.msrb.gmra.mxu0 %vm53_vm0, %v95_v16 }
  0x88   :  { %988 = vmatpush.xpose.msk.msrb.mxu0 %vm53_vm0, %v43_v15 }
  0x8e   :  { %v98_v19 = vpop.f32.mrf.mxu0 }
  0x8f   :  { %987 = vmatmul.msk.f32.vlgmr.msra.gmra.mxu0 %vm53_vm0, %v98_v19 }
  0x90   :  { %990 = vmatpush.xpose.msk.msra.mxu0 %vm53_vm0, %v44_v18 }
  0x96   :  { %v101_v21 = vpop.f32.mrf.mxu0 }
  0x97   :  { %989 = vmatmul.msk.f32.vlgmr.msrb.gmra.mxu0 %vm53_vm0, %v101_v21 }
  0x9e   :  { %v104_v23 = vpop.f32.mrf.mxu0 }
  0x9f   :  { %991 = vmatmul.msk.f32.vlgmr.msra.gmra.mxu0 %vm53_vm0, %v104_v23 }
  0xa6   :  { %v107_v24 = vpop.f32.mrf.mxu0 }
  0xa7   :  { %993 = vmatmul.msk.f32.vlgmr.msra.gmra.mxu2 %vm53_vm0, %v107_v24 }
  0xa8   :  { %632 = vmatpush.msra.mxu2 %v43_v15 }
  0xae   :  { %v110_v25 = vpop.f32.mrf.mxu0 }
  0xaf   :  { %995 = vmatmul.msk.f32.vlgmr.msra.gmra.mxu3 %vm53_vm0, %v110_v25 }
  0xb0   :  { %655 = vmatpush.msra.mxu3 %v44_v18 }
  0xb6   :  { %v113_v26 = vpop.f32.mrf.mxu0 }
  0xb7   :  { %997 = vmatmul.msk.f32.vlgmr.msra.gmra.mxu1 %vm53_vm0, %v113_v26 }
  0xb8   :  { %678 = vmatpush.msra.mxu1 %v45_v14  ;;  %v334_v14 = vld [vmem:[%s1428_s2 + $0x7] sm:$0x1] }
  0xb9   :  { %v342_v15 = vmul.f32 1e+30, %v334_v14 }
  0xbb   :  { %v358_v16 = vperm.slane %v342_v15, 0 }
  0xbe   :  { %v116_v27 = vpop.f32.mrf.mxu0 }
  0xbf   :  { %999 = vmatmul.msk.f32.vlgmr.msrb.gmra.mxu2 %vm53_vm0, %v116_v27 }
  0xc0   :  { %701 = vmatpush.msrb.mxu2 %v46_v17 }
 0x104   :  { %v142_v32 = vpop.f32.mrf.mxu0 }
 0x105   :  { %v367_v33 = vsub.f32 %v142_v32, %v351_v30 }
 0x107   :  { %v376_v35 = vsel %vm375_vm1, %v367_v33, -inf }
 0x108   :  { %377 = vmax.xlane.f32.xlu0 %v376_v35 }
 0x10c   :  { %v168_v38 = vpop.f32.mrf.mxu0 }
 0x10d   :  { %v368_v39 = vsub.f32 %v168_v38, %v352_v36 }
 0x10f   :  { %v379_v41 = vsel %vm375_vm1, %v368_v39, -inf }
 0x110   :  { %380 = vmax.xlane.f32.xlu0 %v379_v41 }
 0x114   :  { %v194_v44 = vpop.f32.mrf.mxu0 }
 0x115   :  { %v369_v45 = vsub.f32 %v194_v44, %v353_v42 }
 0x117   :  { %v382_v47 = vsel %vm375_vm1, %v369_v45, -inf }
 0x118   :  { %383 = vmax.xlane.f32.xlu1 %v382_v47 }
 0x11c   :  { %v220_v49 = vpop.f32.mrf.mxu0 }
 0x11d   :  { %v370_v50 = vsub.f32 %v220_v49, %v354_v48 }
 0x11f   :  { %v385_v51 = vsel %vm375_vm1, %v370_v50, -inf }
 0x120   :  { %386 = vmax.xlane.f32.xlu1 %v385_v51 }
 0x12a   :  { %v246_v56 = vpop.f32.mrf.mxu2 }
 0x12b   :  { %v371_v58 = vsub.f32 %v246_v56, %v355_v54 }
 0x12d   :  { %v388_v60 = vsel %vm375_vm1, %v371_v58, -inf }
 0x12e   :  { %389 = vmax.xlane.f32.xlu2 %v388_v60 }
 0x132   :  { %v272_v0 = vpop.f32.mrf.mxu3 }
 0x133   :  { %v372_v1 = vsub.f32 %v272_v0, %v356_v62 }
 0x134   :  { %v298_v2 = vpop.f32.mrf.mxu1 }
 0x135   :  { %v373_v3 = vsub.f32 %v298_v2, %v357_v63  ;;  %v391_v8 = vsel %vm375_vm1, %v372_v1, -inf }
 0x136   :  { %392 = vmax.xlane.f32.xlu2 %v391_v8 }
 0x137   :  { %v394_v13 = vsel %vm375_vm1, %v373_v3, -inf }
 0x138   :  { %395 = vmax.xlane.f32.xlu0 %v394_v13 }
 0x142   :  { %v324_v17 = vpop.f32.mrf.mxu2 }
 0x143   :  { %v374_v18 = vsub.f32 %v324_v17, %v358_v16 }
 0x145   :  { %v397_v19 = vsel %vm375_vm1, %v374_v18, -inf }
 0x146   :  { %398 = vmax.xlane.f32.xlu2 %v397_v19 }
 0x17b   :  { %v378_v21 = vpop.xlane.xlu0 %377 }
 0x17c   :  { %v400_v23 = vsub.f32 %v367_v33, %v378_v21 }
 0x17e   :  { %v408_v24 = vmul.f32 1.442695, %v400_v23 }
 0x180   :  { %1033 = vpow2.f32 %v408_v24 }
 0x183   :  { %v381_v25 = vpop.xlane.xlu0 %380 }
 0x184   :  { %v401_v26 = vsub.f32 %v368_v39, %v381_v25 }
 0x186   :  { %v1272_v27 = vpop.eup %1033  ;;  %v410_v28 = vmul.f32 1.442695, %v401_v26 }
 0x187   :  { %v424_v29 = vsel %vm375_vm1, %v1272_v27, 0.0 }
 0x188   :  { %1035 = vpow2.f32 %v410_v28  ;;  %425 = vadd.xlane.f32.xlu1 %v424_v29 }
 0x18b   :  { %v384_v30 = vpop.xlane.xlu1 %383 }
 0x18c   :  { %v402_v31 = vsub.f32 %v369_v45, %v384_v30 }
 0x18e   :  { %v1276_v32 = vpop.eup %1035  ;;  %v412_v34 = vmul.f32 1.442695, %v402_v31 }
 0x18f   :  { %v427_v33 = vsel %vm375_vm1, %v1276_v32, 0.0 }
 0x190   :  { %1037 = vpow2.f32 %v412_v34  ;;  %428 = vadd.xlane.f32.xlu0 %v427_v33 }
 0x193   :  { %v387_v35 = vpop.xlane.xlu1 %386 }
 0x194   :  { %v403_v36 = vsub.f32 %v370_v50, %v387_v35 }
 0x196   :  { %v1280_v37 = vpop.eup %1037  ;;  %v414_v38 = vmul.f32 1.442695, %v403_v36 }
 0x197   :  { %v430_v39 = vsel %vm375_vm1, %v1280_v37, 0.0 }
 0x198   :  { %1039 = vpow2.f32 %v414_v38  ;;  %431 = vadd.xlane.f32.xlu1 %v430_v39 }
 0x19e   :  { %v1284_v40 = vpop.eup %1039 }
 0x19f   :  { %v433_v41 = vsel %vm375_vm1, %v1284_v40, 0.0 }
 0x1a0   :  { %434 = vadd.xlane.f32.xlu2 %v433_v41 }
 0x1a1   :  { %v390_v42 = vpop.xlane.xlu2 %389 }
 0x1a2   :  { %v404_v43 = vsub.f32 %v371_v58, %v390_v42 }
 0x1a4   :  { %v416_v44 = vmul.f32 1.442695, %v404_v43 }
 0x1a6   :  { %1041 = vpow2.f32 %v416_v44 }
 0x1a9   :  { %v393_v45 = vpop.xlane.xlu2 %392 }
 0x1aa   :  { %v405_v46 = vsub.f32 %v372_v1, %v393_v45 }
 0x1ab   :  { %v396_v47 = vpop.xlane.xlu0 %395 }
 0x1ac   :  { %v1288_v48 = vpop.eup %1041  ;;  %v418_v49 = vmul.f32 1.442695, %v405_v46  ;;  %v406_v50 = vsub.f32 %v373_v3, %v396_v47 }
 0x1ad   :  { %v436_v51 = vsel %vm375_vm1, %v1288_v48, 0.0 }
 0x1ae   :  { %1043 = vpow2.f32 %v418_v49  ;;  %v420_v52 = vmul.f32 1.442695, %v406_v50  ;;  %437 = vadd.xlane.f32.xlu0 %v436_v51 }
 0x1b0   :  { %1045 = vpow2.f32 %v420_v52 }
 0x1b4   :  { %v1292_v53 = vpop.eup %1043 }
 0x1b5   :  { %v439_v54 = vsel %vm375_vm1, %v1292_v53, 0.0 }
 0x1b6   :  { %v1296_v55 = vpop.eup %1045  ;;  %440 = vadd.xlane.f32.xlu1 %v439_v54 }
 0x1b7   :  { %v442_v56 = vsel %vm375_vm1, %v1296_v55, 0.0 }
 0x1b8   :  { %443 = vadd.xlane.f32.xlu2 %v442_v56 }
 0x1b9   :  { %v399_v57 = vpop.xlane.xlu2 %398 }
 0x1ba   :  { %v407_v58 = vsub.f32 %v374_v18, %v399_v57 }
 0x1bc   :  { %v422_v59 = vmul.f32 1.442695, %v407_v58 }
 0x1be   :  { %1047 = vpow2.f32 %v422_v59 }
 0x1c4   :  { %v1300_v60 = vpop.eup %1047 }
 0x1c5   :  { %v445_v61 = vsel %vm375_vm1, %v1300_v60, 0.0 }
 0x1c6   :  { %446 = vadd.xlane.f32.xlu0 %v445_v61 }
 0x1fb   :  { %v426_v62 = vpop.xlane.xlu1 %425 }
 0x1fc   :  { %1049 = vrcp.f32 %v426_v62  ;;  %v459_v8 = vand.u32 2147483648, %v426_v62  ;;  %v457_v13 = vand.u32 2147483647, %v426_v62  ;;  %vm453_vm3 = vweird.f32 %v426_v62 }
 0x1fe   :  { %v460_v16 = vor.u32 1.1754944e-38, %v459_v8  ;;  %vm458_vm5 = vcmp.eq.f32.partialorder %v457_v13, 8.507059e+37  ;;  %v759_v8 = vld [vmem:[%s1429_s5 + $0x18] sm:$0xff]  ;;  %v758_v13 = vld [vmem:[%s1429_s5 + $0x10] sm:$0xff] }
 0x202   :  { %v1050_v63 = vpop.eup %1049 }
 0x203   :  { %v449_v0 = vmul.f32 %v1050_v63, %v426_v62  ;;  %v429_v1 = vpop.xlane.xlu0 %428  ;;  %vm454_vm2 = vweird.f32 %v1050_v63 }
 0x204   :  { %1051 = vrcp.f32 %v429_v1  ;;  %vm455_vm4 = vmor %vm453_vm3, %vm454_vm2  ;;  %v474_v26 = vand.u32 2147483648, %v429_v1  ;;  %v472_v28 = vand.u32 2147483647, %v429_v1  ;;  %vm468_vm7 = vweird.f32 %v429_v1 }
 0x205   :  { %v450_v2 = vsub.f32 1.0, %v449_v0 }
 0x206   :  { %v475_v31 = vor.u32 1.1754944e-38, %v474_v26  ;;  %vm473_vm9 = vcmp.eq.f32.partialorder %v472_v28, 8.507059e+37 }
 0x207   :  { %v451_v3 = vmul.f32 %v1050_v63, %v450_v2 }
 0x209   :  { %v452_v14 = vadd.f32 %v1050_v63, %v451_v3 }
 0x20a   :  { %v1052_v15 = vpop.eup %1051 }
 0x20b   :  { %v464_v17 = vmul.f32 %v1052_v15, %v429_v1  ;;  %v432_v18 = vpop.xlane.xlu1 %431  ;;  %v456_v19 = vsel %vm455_vm4, %v1050_v63, %v452_v14  ;;  %vm469_vm6 = vweird.f32 %v1052_v15  ;;  %v754_v14 = vld [vmem:[%s1430_s4 + $0x10] sm:$0xff] }
 0x20c   :  { %1053 = vrcp.f32 %v432_v18  ;;  %v461_v23 = vsel %vm458_vm5, %v460_v16, %v456_v19  ;;  %vm470_vm8 = vmor %vm468_vm7, %vm469_vm6  ;;  %v489_v38 = vand.u32 2147483648, %v432_v18  ;;  %v487_v42 = vand.u32 2147483647, %v432_v18  ;;  %v757_v16 = vld [vmem:[%s1429_s5 + $0x8] sm:$0xff] }
 0x20d   :  { %v465_v21 = vsub.f32 1.0, %v464_v17  ;;  %v462_v24 = vmul.f32 %v1272_v27, %v461_v23  ;;  %vm483_vm11 = vweird.f32 %v432_v18  ;;  %v753_v17 = vld [vmem:[%s1430_s4 + $0x8] sm:$0xff] }
 0x20e   :  { %v490_v44 = vor.u32 1.1754944e-38, %v489_v38  ;;  %vm488_vm13 = vcmp.eq.f32.partialorder %v487_v42, 8.507059e+37 }
 0x20f   :  { %v466_v25 = vmul.f32 %v1052_v15, %v465_v21  ;;  %1000 = vmatmul.msk.f32.vlgmr.msrb.gmra.mxu3 %vm375_vm1, %v462_v24 }
 0x210   :  { %724 = vmatpush.msrb.mxu3 %v1222_v20 }
 0x211   :  { %v467_v29 = vadd.f32 %v1052_v15, %v466_v25 }
 0x212   :  { %v1054_v30 = vpop.eup %1053 }
 0x213   :  { %v479_v34 = vmul.f32 %v1054_v30, %v432_v18  ;;  %v435_v33 = vpop.xlane.xlu2 %434  ;;  %v471_v35 = vsel %vm470_vm8, %v1052_v15, %v467_v29  ;;  %vm484_vm10 = vweird.f32 %v1054_v30 }
 0x214   :  { %1055 = vrcp.f32 %v435_v33  ;;  %v476_v27 = vsel %vm473_vm9, %v475_v31, %v471_v35  ;;  %vm485_vm12 = vmor %vm483_vm11, %vm484_vm10  ;;  %v502_v52 = vand.u32 2147483647, %v435_v33  ;;  %vm498_vm15 = vweird.f32 %v435_v33 }
 0x215   :  { %v480_v36 = vsub.f32 1.0, %v479_v34  ;;  %v477_v39 = vmul.f32 %v1276_v32, %v476_v27  ;;  %v504_v32 = vand.u32 2147483648, %v435_v33 }
 0x216   :  { %vm503_vm3 = vcmp.eq.f32.partialorder %v502_v52, 8.507059e+37 }
 0x217   :  { %v481_v41 = vmul.f32 %v1054_v30, %v480_v36  ;;  %1001 = vmatmul.msk.f32.vlgmr.msrb.gmra.mxu1 %vm375_vm1, %v477_v39 }
 0x218   :  { %747 = vmatpush.msrb.mxu1 %v1231_v22  ;;  %v505_v22 = vor.u32 1.1754944e-38, %v504_v32 }
 0x219   :  { %v482_v43 = vadd.f32 %v1054_v30, %v481_v41 }
 0x21a   :  { %v1056_v20 = vpop.eup %1055 }
 0x21b   :  { %v486_v45 = vsel %vm485_vm12, %v1054_v30, %v482_v43  ;;  %v494_v46 = vmul.f32 %v1056_v20, %v435_v33  ;;  %vm499_vm14 = vweird.f32 %v1056_v20 }
 0x21c   :  { %v491_v47 = vsel %vm488_vm13, %v490_v44, %v486_v45  ;;  %vm500_vm2 = vmor %vm498_vm15, %vm499_vm14 }
 0x21d   :  { %v495_v49 = vsub.f32 1.0, %v494_v46  ;;  %v492_v50 = vmul.f32 %v1280_v37, %v491_v47 }
 0x21f   :  { %v496_v51 = vmul.f32 %v1056_v20, %v495_v49  ;;  %1002 = vmatmul.msk.f32.vlgmr.msra.gmra.mxu2 %vm375_vm1, %v492_v50 }
 0x220   :  { %772 = vmatpush.msra.mxu2 %v759_v8 }
 0x221   :  { %v497_v54 = vadd.f32 %v1056_v20, %v496_v51  ;;  %v438_v56 = vpop.xlane.xlu0 %437 }
 0x222   :  { %1057 = vrcp.f32 %v438_v56  ;;  %v519_v1 = vand.u32 2147483648, %v438_v56  ;;  %v517_v3 = vand.u32 2147483647, %v438_v56  ;;  %vm513_vm5 = vweird.f32 %v438_v56  ;;  %773 = vmatpush.msra.mxu2 %v758_v13 }
 0x223   :  { %v501_v57 = vsel %vm500_vm2, %v1056_v20, %v497_v54 }
 0x224   :  { %v506_v58 = vsel %vm503_vm3, %v505_v22, %v501_v57  ;;  %v520_v19 = vor.u32 1.1754944e-38, %v519_v1  ;;  %vm518_vm7 = vcmp.eq.f32.partialorder %v517_v3, 8.507059e+37  ;;  %774 = vmatpush.msra.mxu2 %v757_v16 }
 0x225   :  { %v507_v59 = vmul.f32 %v1284_v40, %v506_v58  ;;  %v755_v40 = vld [vmem:[%s1430_s4 + $0x18] sm:$0xff]  ;;  %v756_v58 = vld [vmem:[%s1429_s5] sm:$0xff] }
 0x226   :  { %775 = vmatpush.msra.mxu2 %v756_v58 }
 0x227   :  { %1003 = vmatmul.msk.f32.vlgmr.msra.gmra.mxu3 %vm375_vm1, %v507_v59  ;;  %v752_v59 = vld [vmem:[%s1430_s4] sm:$0xff] }
 0x228   :  { %v1058_v37 = vpop.eup %1057  ;;  %837 = vmatpush.msra.mxu3 %v755_v40 }
 0x229   :  { %v509_v61 = vmul.f32 %v1058_v37, %v438_v56  ;;  %v441_v62 = vpop.xlane.xlu1 %440  ;;  %vm514_vm4 = vweird.f32 %v1058_v37 }
 0x22a   :  { %1059 = vrcp.f32 %v441_v62  ;;  %vm515_vm6 = vmor %vm513_vm5, %vm514_vm4  ;;  %838 = vmatpush.msra.mxu3 %v754_v14  ;;  %v534_v30 = vand.u32 2147483648, %v441_v62  ;;  %v532_v34 = vand.u32 2147483647, %v441_v62  ;;  %vm528_vm9 = vweird.f32 %v441_v62 }
 0x22b   :  { %v510_v63 = vsub.f32 1.0, %v509_v61  ;;  %v444_v0 = vpop.xlane.xlu2 %443  ;;  %v891_v61 = vld [vmem:[%s1432_s6 + $0x8] sm:$0xff] }
 0x22c   :  { %1061 = vrcp.f32 %v444_v0  ;;  %839 = vmatpush.msra.mxu3 %v753_v17  ;;  %v549_v35 = vand.u32 2147483648, %v444_v0  ;;  %v547_v38 = vand.u32 2147483647, %v444_v0  ;;  %v535_v39 = vor.u32 1.1754944e-38, %v534_v30 }
 0x22d   :  { %v511_v2 = vmul.f32 %v1058_v37, %v510_v63  ;;  %vm533_vm12 = vcmp.eq.f32.partialorder %v532_v34, 8.507059e+37  ;;  %vm543_vm13 = vweird.f32 %v444_v0 }
 0x22e   :  { %v550_v20 = vor.u32 1.1754944e-38, %v549_v35  ;;  %vm548_vm15 = vcmp.eq.f32.partialorder %v547_v38, 8.507059e+37  ;;  %840 = vmatpush.msra.mxu3 %v752_v59 }
 0x22f   :  { %v512_v15 = vadd.f32 %v1058_v37, %v511_v2 }
 0x230   :  { %v1060_v18 = vpop.eup %1059 }
 0x231   :  { %v516_v21 = vsel %vm515_vm6, %v1058_v37, %v512_v15  ;;  %v524_v23 = vmul.f32 %v1060_v18, %v441_v62  ;;  %vm529_vm8 = vweird.f32 %v1060_v18  ;;  %v890_v62 = vld [vmem:[%s1432_s6] sm:$0xff] }
 0x232   :  { %v1062_v24 = vpop.eup %1061  ;;  %v521_v25 = vsel %vm518_vm7, %v520_v19, %v516_v21  ;;  %vm530_vm11 = vmor %vm528_vm9, %vm529_vm8 }
 0x233   :  { %v525_v26 = vsub.f32 1.0, %v524_v23  ;;  %v539_v28 = vmul.f32 %v1062_v24, %v444_v0  ;;  %v522_v29 = vmul.f32 %v1288_v48, %v521_v25  ;;  %vm544_vm10 = vweird.f32 %v1062_v24 }
 0x234   :  { %vm545_vm14 = vmor %vm543_vm13, %vm544_vm10 }
 0x235   :  { %v526_v31 = vmul.f32 %v1060_v18, %v525_v26  ;;  %v540_v33 = vsub.f32 1.0, %v539_v28  ;;  %1004 = vmatmul.msk.f32.vlgmr.msra.gmra.mxu1 %vm375_vm1, %v522_v29 }
 0x237   :  { %v527_v36 = vadd.f32 %v1060_v18, %v526_v31  ;;  %v541_v27 = vmul.f32 %v1062_v24, %v540_v33 }
 0x239   :  { %v531_v41 = vsel %vm530_vm11, %v1060_v18, %v527_v36  ;;  %v542_v42 = vadd.f32 %v1062_v24, %v541_v27  ;;  %v447_v48 = vpop.xlane.xlu0 %446 }
 0x23a   :  { %v536_v43 = vsel %vm533_vm12, %v535_v39, %v531_v41  ;;  %1063 = vrcp.f32 %v447_v48  ;;  %v564_v51 = vand.u32 2147483648, %v447_v48  ;;  %v562_v54 = vand.u32 2147483647, %v447_v48 }
 0x23b   :  { %v537_v44 = vmul.f32 %v1292_v53, %v536_v43  ;;  %v546_v45 = vsel %vm545_vm14, %v1062_v24, %v542_v42  ;;  %vm558_vm3 = vweird.f32 %v447_v48 }
 0x23c   :  { %v551_v46 = vsel %vm548_vm15, %v550_v20, %v546_v45  ;;  %v565_v53 = vor.u32 1.1754944e-38, %v564_v51  ;;  %vm563_vm5 = vcmp.eq.f32.partialorder %v562_v54, 8.507059e+37 }
 0x23d   :  { %v552_v47 = vmul.f32 %v1296_v55, %v551_v46  ;;  %1005 = vmatmul.msk.f32.vlgmr.msrb.gmra.mxu2 %vm375_vm1, %v537_v44 }
 0x23f   :  { %1006 = vmatmul.msk.f32.vlgmr.msrb.gmra.mxu3 %vm375_vm1, %v552_v47 }
 0x240   :  { %v1064_v49 = vpop.eup %1063 }
 0x241   :  { %v554_v50 = vmul.f32 %v1064_v49, %v447_v48  ;;  %vm559_vm2 = vweird.f32 %v1064_v49 }
 0x242   :  { %vm560_vm4 = vmor %vm558_vm3, %vm559_vm2 }
 0x243   :  { %v555_v32 = vsub.f32 1.0, %v554_v50  ;;  %v1032_v50 = vld [vmem:[%s1431_s7] ss:$0 sm:$0xff] }
 0x245   :  { %v556_v52 = vmul.f32 %v1064_v49, %v555_v32  ;;  %1008 = vmatmul.msk.f32.vlgmr.msra.gmra.mxu2 %vm53_vm0, %v1141_v4 }
 0x247   :  { %v557_v56 = vadd.f32 %v1064_v49, %v556_v52 }
 0x249   :  { %v561_v22 = vsel %vm560_vm4, %v1064_v49, %v557_v56 }
 0x24a   :  { %v566_v57 = vsel %vm563_vm5, %v565_v53, %v561_v22 }
 0x24b   :  { %v567_v55 = vmul.f32 %v1300_v60, %v566_v57 }
 0x24d   :  { %1007 = vmatmul.msk.f32.vlgmr.msrb.gmra.mxu1 %vm375_vm1, %v567_v55  ;;  %1009 = vmatmul.msk.f32.gmra.mxu2 %vm53_vm0, %v1148_v5 }
 0x255   :  { %1010 = vmatmul.msk.f32.gmra.mxu2 %vm53_vm0, %v1155_v6 }
 0x25d   :  { %1011 = vmatmul.msk.f32.gmra.mxu2 %vm53_vm0, %v1162_v7 }
 0x265   :  { %1012 = vmatmul.msk.f32.gmra.mxu2 %vm53_vm0, %v1173_v9 }
 0x26d   :  { %1013 = vmatmul.msk.f32.gmra.mxu2 %vm53_vm0, %v1180_v10 }
 0x275   :  { %1014 = vmatmul.msk.f32.gmra.mxu2 %vm53_vm0, %v1187_v11  ;;  %v893_v11 = vld [vmem:[%s1432_s6 + $0x18] sm:$0xff] }
 0x276   :  { %935 = vmatpush.msra.mxu1 %v893_v11 }
 0x27d   :  { %1015 = vmatmul.msk.f32.gmra.mxu2 %vm53_vm0, %v1194_v12  ;;  %v892_v12 = vld [vmem:[%s1432_s6 + $0x10] sm:$0xff] }
 0x27e   :  { %936 = vmatpush.msra.mxu1 %v892_v12 }
 0x280   :  { %937 = vmatpush.msra.mxu1 %v891_v61 }
 0x282   :  { %938 = vmatpush.msra.mxu1 %v890_v62 }
 0x292   :  { %v588_v60 = vpop.f32.mrf.mxu3 }
 0x293   :  { %1016 = vmatmul.msk.f32.vlgmr.msra.gmra.mxu3 %vm53_vm0, %v588_v60 }
 0x294   :  { %v611_v37 = vpop.f32.mrf.mxu1 }
 0x29b   :  { %1017 = vmatmul.msk.f32.gmra.mxu3 %vm53_vm0, %v611_v37 }
 0x2a2   :  { %v634_v4 = vpop.f32.mrf.mxu2 }
 0x2a3   :  { %1018 = vmatmul.msk.f32.gmra.mxu3 %vm53_vm0, %v634_v4 }
 0x2aa   :  { %v657_v5 = vpop.f32.mrf.mxu3 }
 0x2ab   :  { %1019 = vmatmul.msk.f32.gmra.mxu3 %vm53_vm0, %v657_v5 }
 0x2b2   :  { %v680_v6 = vpop.f32.mrf.mxu1 }
 0x2b3   :  { %1020 = vmatmul.msk.f32.gmra.mxu3 %vm53_vm0, %v680_v6 }
 0x2c0   :  { %v703_v7 = vpop.f32.mrf.mxu2 }
 0x2c1   :  { %1021 = vmatmul.msk.f32.gmra.mxu3 %vm53_vm0, %v703_v7 }
 0x2c2   :  { %v726_v9 = vpop.f32.mrf.mxu3 }
 0x2c8   :  { %v777_v63 = vpop.f32.mrf.mxu2 }
 0x2c9   :  { %1022 = vmatmul.msk.f32.gmra.mxu3 %vm53_vm0, %v726_v9 }
 0x2ca   :  { %v749_v10 = vpop.f32.mrf.mxu1 }
 0x2d0   :  { %v780_v1 = vpop.f32.mrf.mxu2 }
 0x2d1   :  { %1023 = vmatmul.msk.f32.gmra.mxu3 %vm53_vm0, %v749_v10 }
 0x2d8   :  { %v783_v13 = vpop.f32.mrf.mxu2 }
 0x2e0   :  { %v786_v18 = vpop.f32.mrf.mxu2 }
 0x2e8   :  { %v789_v25 = vpop.f32.mrf.mxu2 }
 0x2f0   :  { %v792_v31 = vpop.f32.mrf.mxu2 }
 0x2f8   :  { %v795_v38 = vpop.f32.mrf.mxu2 }
 0x300   :  { %v798_v48 = vpop.f32.mrf.mxu2 }
 0x316   :  { %v842_v0 = vpop.f32.mrf.mxu3 }
 0x317   :  { %v843_v2 = vadd.f32 %v842_v0, %v777_v63 }
 0x319   :  { %1065 = vtanh.f32 %v843_v2 }
 0x31e   :  { %v845_v3 = vpop.f32.mrf.mxu3 }
 0x31f   :  { %v1066_v8 = vpop.eup %1065  ;;  %v846_v40 = vadd.f32 %v845_v3, %v780_v1 }
 0x320   :  { %874 = vst.msk [vmem:[#allocation2] sm:$0xff] %vm53_vm0, %v1066_v8 }
 0x321   :  { %1067 = vtanh.f32 %v846_v40 }
 0x326   :  { %v848_v14 = vpop.f32.mrf.mxu3 }
 0x327   :  { %v1068_v15 = vpop.eup %1067  ;;  %v849_v16 = vadd.f32 %v848_v14, %v783_v13  ;;  %v882_v17 = vld [vmem:[#allocation2] sm:$0xff] }
 0x328   :  { %875 = vst.msk [vmem:[#allocation2 + $0x8] sm:$0xff] %vm53_vm0, %v1068_v15  ;;  %1024 = vmatmul.msk.f32.vlgmr.msra.gmra.mxu1 %vm53_vm0, %v882_v17 }
 0x329   :  { %1069 = vtanh.f32 %v849_v16 }
 0x32e   :  { %v851_v19 = vpop.f32.mrf.mxu3 }
 0x32f   :  { %v1070_v21 = vpop.eup %1069  ;;  %v852_v23 = vadd.f32 %v851_v19, %v786_v18  ;;  %v883_v24 = vld [vmem:[#allocation2 + $0x8] sm:$0xff] }
 0x330   :  { %876 = vst.msk [vmem:[#allocation2 + $0x10] sm:$0xff] %vm53_vm0, %v1070_v21  ;;  %1025 = vmatmul.msk.f32.gmra.mxu1 %vm53_vm0, %v883_v24 }
 0x331   :  { %1071 = vtanh.f32 %v852_v23 }
 0x336   :  { %v854_v26 = vpop.f32.mrf.mxu3 }
 0x337   :  { %v1072_v28 = vpop.eup %1071  ;;  %v855_v29 = vadd.f32 %v854_v26, %v789_v25  ;;  %v884_v30 = vld [vmem:[#allocation2 + $0x10] sm:$0xff] }
 0x338   :  { %877 = vst.msk [vmem:[#allocation2 + $0x18] sm:$0xff] %vm53_vm0, %v1072_v28  ;;  %1026 = vmatmul.msk.f32.gmra.mxu1 %vm53_vm0, %v884_v30 }
 0x339   :  { %1073 = vtanh.f32 %v855_v29 }
 0x33f   :  { %v1074_v34 = vpop.eup %1073  ;;  %v885_v33 = vld [vmem:[#allocation2 + $0x18] sm:$0xff] }
 0x340   :  { %878 = vst.msk [vmem:[#allocation2 + $0x20] sm:$0xff] %vm53_vm0, %v1074_v34  ;;  %1027 = vmatmul.msk.f32.gmra.mxu1 %vm53_vm0, %v885_v33 }
 0x344   :  { %v857_v35 = vpop.f32.mrf.mxu3 }
 0x345   :  { %v858_v36 = vadd.f32 %v857_v35, %v792_v31 }
 0x347   :  { %1075 = vtanh.f32 %v858_v36  ;;  %v886_v27 = vld [vmem:[#allocation2 + $0x20] sm:$0xff] }
 0x348   :  { %1028 = vmatmul.msk.f32.gmra.mxu1 %vm53_vm0, %v886_v27 }
 0x34c   :  { %v860_v39 = vpop.f32.mrf.mxu3 }
 0x34d   :  { %v1076_v41 = vpop.eup %1075  ;;  %v861_v42 = vadd.f32 %v860_v39, %v795_v38 }
 0x34e   :  { %879 = vst.msk [vmem:[#allocation2 + $0x28] sm:$0xff] %vm53_vm0, %v1076_v41 }
 0x34f   :  { %1077 = vtanh.f32 %v861_v42 }
 0x354   :  { %v863_v43 = vpop.f32.mrf.mxu3 }
 0x355   :  { %v1078_v20 = vpop.eup %1077  ;;  %v864_v44 = vadd.f32 %v863_v43, %v798_v48  ;;  %v887_v45 = vld [vmem:[#allocation2 + $0x28] sm:$0xff] }
 0x356   :  { %880 = vst.msk [vmem:[#allocation2 + $0x30] sm:$0xff] %vm53_vm0, %v1078_v20  ;;  %1029 = vmatmul.msk.f32.gmra.mxu1 %vm53_vm0, %v887_v45 }
 0x357   :  { %1079 = vtanh.f32 %v864_v44 }
 0x35d   :  { %v1080_v46 = vpop.eup %1079  ;;  %v888_v47 = vld [vmem:[#allocation2 + $0x30] sm:$0xff] }
 0x35e   :  { %881 = vst.msk [vmem:[#allocation2 + $0x38] sm:$0xff] %vm53_vm0, %v1080_v46  ;;  %1030 = vmatmul.msk.f32.gmra.mxu1 %vm53_vm0, %v888_v47 }
 0x365   :  { %v889_v49 = vld [vmem:[#allocation2 + $0x38] sm:$0xff] }
 0x366   :  { %1031 = vmatmul.msk.f32.gmra.mxu1 %vm53_vm0, %v889_v49 }
 0x3a5   :  { %v940_v32 = vpop.f32.mrf.mxu1 }
 0x3a6   :  { %v941_v51 = vadd.f32 %v1032_v50, %v940_v32 }
 0x3a8   :  { %964 = vst [vmem:[%s1433_s8] sm:$0xff] %v941_v51 }
 0x3ad   :  { %v943_v52 = vpop.f32.mrf.mxu1 }
 0x3ae   :  { %v944_v54 = vadd.f32 %v1032_v50, %v943_v52 }
 0x3b0   :  { %965 = vst [vmem:[%s1433_s8 + $0x8] sm:$0xff] %v944_v54 }
 0x3b5   :  { %v946_v56 = vpop.f32.mrf.mxu1 }
 0x3b6   :  { %v947_v53 = vadd.f32 %v1032_v50, %v946_v56 }
 0x3b8   :  { %966 = vst [vmem:[%s1433_s8 + $0x10] sm:$0xff] %v947_v53 }
 0x3bd   :  { %v949_v22 = vpop.f32.mrf.mxu1 }
 0x3be   :  { %v950_v57 = vadd.f32 %v1032_v50, %v949_v22 }
 0x3c0   :  { %967 = vst [vmem:[%s1433_s8 + $0x18] sm:$0xff] %v950_v57 }
 0x3c5   :  { %v952_v55 = vpop.f32.mrf.mxu1 }
 0x3c6   :  { %v953_v58 = vadd.f32 %v1032_v50, %v952_v55 }
 0x3c8   :  { %968 = vst [vmem:[%s1433_s8 + $0x20] sm:$0xff] %v953_v58 }
 0x3d3   :  { %v955_v59 = vpop.f32.mrf.mxu1 }
 0x3d4   :  { %v956_v60 = vadd.f32 %v1032_v50, %v955_v59 }
 0x3d6   :  { %969 = vst [vmem:[%s1433_s8 + $0x28] sm:$0xff] %v956_v60 }
 0x3db   :  { %v958_v37 = vpop.f32.mrf.mxu1 }
 0x3dc   :  { %v959_v4 = vadd.f32 %v1032_v50, %v958_v37 }
 0x3de   :  { %970 = vst [vmem:[%s1433_s8 + $0x30] sm:$0xff] %v959_v4 }
 0x3e3   :  { %v961_v5 = vpop.f32.mrf.mxu1 }
 0x3e4   :  { %v962_v6 = vadd.f32 %v1032_v50, %v961_v5 }
 0x3e6   :  { %971 = vst [vmem:[%s1433_s8 + $0x38] sm:$0xff] %v962_v6 }

// kernel: speaker_decoder_forward.2
= control target key start
LH: loop header
LB: loop body
LE: loop exit
PB: predicated region body
PF: predicated region fallthrough
CT: control target
= control target key end

     0   :  { %vm42_vm0 = vcmask 261120   ;;  %v1062_v21 = vmov 1983009808   ;;  %vm109_vm1 = vcmask 1047556   ;;  %v1063_v47 = vmov 1934713408   ;;  %s1408_s3 = inlined_call_operand.vmem [shape: f32[32,128], index: 3, kind: input, shape index: {}]   ;;  %s1409_s0 = inlined_call_operand.vmem [shape: f32[8,8,32], index: 0, kind: input, shape index: {}]   ;;  %s1410_s5 = inlined_call_operand.vmem [shape: f32[1,128], index: 5, kind: input, shape index: {}]   ;;  %s1411_s4 = inlined_call_operand.vmem [shape: f32[32,128], index: 4, kind: input, shape index: {}]   ;;  %s1412_s1 = inlined_call_operand.vmem [shape: f32[8,32], index: 1, kind: input, shape index: {}]   ;;  %s1413_s2 = inlined_call_operand.vmem [shape: f32[8,32], index: 2, kind: input, shape index: {}]   ;;  %s1414_s8 = inlined_call_operand.vmem [shape: f32[8,32], index: 8, kind: output, shape index: {2}]   ;;  %s1415_s7 = inlined_call_operand.vmem [shape: f32[8,32], index: 7, kind: output, shape index: {1}]   ;;  %s1416_s6 = inlined_call_operand.vmem [shape: f32[8,8,32], index: 6, kind: output, shape index: {0}]  }
   0x1   :  { %v37_v0 = vld [vmem:[%s1408_s3 + $0x18] sm:$0xff]  ;;  %v36_v1 = vld [vmem:[%s1408_s3 + $0x10] sm:$0xff]  ;;  %v35_v2 = vld [vmem:[%s1408_s3 + $0x8] sm:$0xff]  ;;  %v114_v22 = vunpack.c.l.s4 %v1062_v21  ;;  %v162_v48 = vunpack.c.l.s4 %v1063_v47  ;;  %s1065_s17 = smov 32  }
   0x2   :  { %79 = vmatpush.msra.mxu0 %v37_v0  ;;  %982 = vmatpush.msra.mxu3 %v37_v0  ;;  %v34_v3 = vld [vmem:[%s1408_s3] sm:$0xff]  ;;  %v32_v5 = vld [vmem:[%s1409_s0 + $0x30] sm:$0xff]  ;;  %v31_v6 = vld [vmem:[%s1409_s0 + $0x28] sm:$0xff] }
   0x3   :  { %981 = vmatpush.msra.mxu2 %v37_v0  ;;  %980 = vmatpush.msra.mxu1 %v37_v0  ;;  %v26_v4 = vld [vmem:[%s1409_s0] sm:$0xff]  ;;  %v1141_v8 = vld [vmem:[%s1411_s4 + $0x18] sm:$0xff]  ;;  %v1148_v9 = vld [vmem:[%s1411_s4 + $0x10] sm:$0xff]  ;;  %v1211_v27 = vunpack.c.0.s8 %v114_v22  ;;  %v1224_v57 = vunpack.c.0.s8 %v162_v48 }
   0x4   :  { %80 = vmatpush.msra.mxu0 %v36_v1  ;;  %985 = vmatpush.msra.mxu3 %v36_v1  ;;  %v30_v7 = vld [vmem:[%s1409_s0 + $0x20] sm:$0xff]  ;;  %v1155_v10 = vld [vmem:[%s1411_s4 + $0x8] sm:$0xff]  ;;  %v33_v12 = vld [vmem:[%s1409_s0 + $0x38] sm:$0xff] }
   0x5   :  { %984 = vmatpush.msra.mxu2 %v36_v1  ;;  %983 = vmatpush.msra.mxu1 %v36_v1  ;;  %v27_v11 = vld [vmem:[%s1409_s0 + $0x8] sm:$0xff]  ;;  %v1169_v13 = vld [vmem:[%s1411_s4] sm:$0xff]  ;;  %v28_v15 = vld [vmem:[%s1409_s0 + $0x10] sm:$0xff] }
   0x6   :  { %81 = vmatpush.msra.mxu0 %v35_v2  ;;  %988 = vmatpush.msra.mxu3 %v35_v2  ;;  %v229_v14 = vld [vmem:[%s1412_s1] sm:$0xff]  ;;  %v29_v16 = vld [vmem:[%s1409_s0 + $0x18] sm:$0xff]  ;;  %s1064_s0 = smov 64  }
   0x7   :  { %987 = vmatpush.msra.mxu2 %v35_v2  ;;  %986 = vmatpush.msra.mxu1 %v35_v2  ;;  %v997_v18 = vld [vmem:[%s1410_s5] ss:$0 sm:$0xff] }
   0x8   :  { %82 = vmatpush.msra.mxu0 %v34_v3  ;;  %991 = vmatpush.msra.mxu3 %v34_v3  ;;  %v230_v48 = vld [vmem:[%s1413_s2] sm:$0xff]  ;;  %s1066_s2 = smov 96  }
   0x9   :  { %956 = vmatmul.msk.f32.vlgmr.msra.gmra.mxu0 %vm42_vm0, %v26_v4  ;;  %962 = vmatmul.msk.f32.vlgmr.msra.gmra.mxu3 %vm42_vm0, %v32_v5 }
   0xa   :  { %990 = vmatpush.msra.mxu2 %v34_v3  ;;  %989 = vmatpush.msra.mxu1 %v34_v3 }
   0xb   :  { %961 = vmatmul.msk.f32.vlgmr.msra.gmra.mxu2 %vm42_vm0, %v31_v6  ;;  %960 = vmatmul.msk.f32.vlgmr.msra.gmra.mxu1 %vm42_vm0, %v30_v7 }
   0xc   :  { %251 = vmatpush.msrb.mxu1 %v1141_v8  ;;  %326 = vmatpush.msrb.mxu2 %v1141_v8 }
   0xd   :  { %398 = vmatpush.msrb.mxu3 %v1141_v8 }
   0xe   :  { %252 = vmatpush.msrb.mxu1 %v1148_v9  ;;  %327 = vmatpush.msrb.mxu2 %v1148_v9 }
   0xf   :  { %399 = vmatpush.msrb.mxu3 %v1148_v9 }
  0x10   :  { %253 = vmatpush.msrb.mxu1 %v1155_v10  ;;  %328 = vmatpush.msrb.mxu2 %v1155_v10 }
  0x11   :  { %957 = vmatmul.msk.f32.gmra.mxu0 %vm42_vm0, %v27_v11  ;;  %963 = vmatmul.msk.f32.gmra.mxu3 %vm42_vm0, %v33_v12 }
  0x12   :  { %254 = vmatpush.msrb.mxu1 %v1169_v13  ;;  %329 = vmatpush.msrb.mxu2 %v1169_v13 }
  0x13   :  { %964 = vmatmul.msk.f32.vlgmr.msrb.gmra.mxu1 %vm42_vm0, %v229_v14  ;;  %400 = vmatpush.msrb.mxu3 %v1155_v10 }
  0x14   :  { %470 = vmatpush.msra.mxu1 %v1141_v8  ;;  %542 = vmatpush.msra.mxu2 %v1141_v8 }
  0x15   :  { %401 = vmatpush.msrb.mxu3 %v1169_v13 }
  0x16   :  { %471 = vmatpush.msra.mxu1 %v1148_v9  ;;  %543 = vmatpush.msra.mxu2 %v1148_v9 }
  0x17   :  { %614 = vmatpush.msra.mxu3 %v1141_v8 }
  0x18   :  { %472 = vmatpush.msra.mxu1 %v1155_v10  ;;  %544 = vmatpush.msra.mxu2 %v1155_v10 }
  0x19   :  { %958 = vmatmul.msk.f32.gmra.mxu0 %vm42_vm0, %v28_v15  ;;  %615 = vmatpush.msra.mxu3 %v1148_v9 }
  0x1a   :  { %473 = vmatpush.msra.mxu1 %v1169_v13  ;;  %545 = vmatpush.msra.mxu2 %v1169_v13 }
  0x1b   :  { %616 = vmatpush.msra.mxu3 %v1155_v10 }
  0x1c   :  { %686 = vmatpush.msrb.mxu1 %v1141_v8 }
  0x1d   :  { %617 = vmatpush.msra.mxu3 %v1169_v13 }
  0x1e   :  { %687 = vmatpush.msrb.mxu1 %v1148_v9 }
  0x20   :  { %688 = vmatpush.msrb.mxu1 %v1155_v10 }
  0x21   :  { %959 = vmatmul.msk.f32.gmra.mxu0 %vm42_vm0, %v29_v16 }
  0x22   :  { %689 = vmatpush.msrb.mxu1 %v1169_v13 }
  0x86   :  { %v84_v17 = vpop.f32.mrf.mxu0 }
  0x87   :  { %v85_v34 = vadd.f32 %v997_v18, %v84_v17 }
  0x88   :  { %v96_v19 = vpop.f32.mrf.mxu1 }
  0x89   :  { %v97_v20 = vadd.f32 %v997_v18, %v96_v19  ;;  %v111_v41 = vrot.slane %v85_v34, 4 }
  0x8b   :  { %v135_v23 = vrot.slane %v97_v20, 4 }
  0x8c   :  { %v102_v24 = vpop.f32.mrf.mxu3 }
  0x8d   :  { %v103_v25 = vadd.f32 %v997_v18, %v102_v24 }
  0x8e   :  { %v87_v26 = vpop.f32.mrf.mxu0  ;;  %v99_v28 = vpop.f32.mrf.mxu2 }
  0x8f   :  { %v133_v29 = vrot.slane %v103_v25, 4  ;;  %v136_v30 = vsel %vm109_vm1, %v103_v25, %v135_v23  ;;  %v100_v31 = vadd.f32 %v997_v18, %v99_v28  ;;  %v88_v55 = vadd.f32 %v997_v18, %v87_v26 }
  0x90   :  { %v144_v33 = vperm.slane %v136_v30, %v1211_v27 }
  0x91   :  { %v134_v32 = vsel %vm109_vm1, %v133_v29, %v97_v20  ;;  %v147_v35 = vrot.slane %v100_v31, 4  ;;  %v123_v63 = vrot.slane %v88_v55, 4 }
  0x92   :  { %v140_v36 = vperm.slane %v134_v32, %v1211_v27  ;;  %v195_v39 = vrot.slane %v144_v33, 4 }
  0x94   :  { %v105_v37 = vpop.f32.mrf.mxu3  ;;  %v183_v45 = vrot.slane %v140_v36, 4 }
  0x95   :  { %v106_v38 = vadd.f32 %v997_v18, %v105_v37 }
  0x96   :  { %v90_v40 = vpop.f32.mrf.mxu0 }
  0x97   :  { %v145_v42 = vrot.slane %v106_v38, 4  ;;  %v148_v43 = vsel %vm109_vm1, %v106_v38, %v147_v35  ;;  %v91_v44 = vadd.f32 %v997_v18, %v90_v40  ;;  %v256_v35 = vpop.f32.mrf.mxu1 }
  0x98   :  { %v156_v46 = vperm.slane %v148_v43, %v1211_v27 }
  0x99   :  { %v146_v49 = vsel %vm109_vm1, %v145_v42, %v100_v31  ;;  %v108_v50 = vrot.slane %v91_v44, 4  ;;  %v112_v51 = vsel %vm109_vm1, %v91_v44, %v111_v41 }
  0x9a   :  { %v152_v52 = vperm.slane %v146_v49, %v1211_v27  ;;  %v193_v53 = vrot.slane %v156_v46, 4  ;;  %v196_v54 = vsel %vm109_vm1, %v156_v46, %v195_v39  ;;  %v120_v61 = vperm.slane %v112_v51, %v1211_v27 }
  0x9b   :  { %v110_v56 = vsel %vm109_vm1, %v108_v50, %v85_v34  ;;  %v204_v2 = vperm.slane %v196_v54, %v1224_v57 }
  0x9c   :  { %v184_v58 = vsel %vm109_vm1, %v152_v52, %v183_v45  ;;  %v181_v59 = vrot.slane %v152_v52, 4  ;;  %v194_v60 = vsel %vm109_vm1, %v193_v53, %v144_v33  ;;  %v116_v0 = vperm.slane %v110_v56, %v1211_v27 }
  0x9d   :  { %v192_v6 = vperm.slane %v184_v58, %v1224_v57  ;;  %v171_v7 = vrot.slane %v120_v61, 4  ;;  %v200_v12 = vperm.slane %v194_v60, %v1224_v57  ;;  %v217_v22 = vrot.slane %v204_v2, 4 }
  0x9e   :  { %v93_v62 = vpop.f32.mrf.mxu0  ;;  %v182_v5 = vsel %vm109_vm1, %v181_v59, %v140_v36  ;;  %v159_v14 = vrot.slane %v116_v0, 4 }
  0x9f   :  { %v94_v1 = vadd.f32 %v997_v18, %v93_v62  ;;  %v188_v18 = vperm.slane %v182_v5, %v1224_v57  ;;  %v209_v20 = vrot.slane %v192_v6, 4  ;;  %v213_v26 = vrot.slane %v200_v12, 4 }
  0xa1   :  { %v121_v3 = vrot.slane %v94_v1, 4  ;;  %v124_v4 = vsel %vm109_vm1, %v94_v1, %v123_v63  ;;  %v205_v33 = vrot.slane %v188_v18, 4 }
  0xa2   :  { %v132_v11 = vperm.slane %v124_v4, %v1211_v27 }
  0xa3   :  { %v122_v15 = vsel %vm109_vm1, %v121_v3, %v88_v55 }
  0xa4   :  { %v128_v16 = vperm.slane %v122_v15, %v1211_v27  ;;  %v169_v17 = vrot.slane %v132_v11, 4  ;;  %v172_v19 = vsel %vm109_vm1, %v132_v11, %v171_v7 }
  0xa5   :  { %v180_v21 = vperm.slane %v172_v19, %v1224_v57 }
  0xa6   :  { %v157_v23 = vrot.slane %v128_v16, 4  ;;  %v160_v24 = vsel %vm109_vm1, %v128_v16, %v159_v14  ;;  %v170_v25 = vsel %vm109_vm1, %v169_v17, %v120_v61 }
  0xa7   :  { %v168_v28 = vperm.slane %v160_v24, %v1224_v57  ;;  %v176_v29 = vperm.slane %v170_v25, %v1224_v57  ;;  %v1246_v30 = vsel %vm109_vm1, %v217_v22, %v180_v21  ;;  %v219_v31 = vrot.slane %v180_v21, 4 }
  0xa8   :  { %v158_v32 = vsel %vm109_vm1, %v157_v23, %v116_v0 }
  0xa9   :  { %v164_v34 = vperm.slane %v158_v32, %v1224_v57  ;;  %v1251_v36 = vsel %vm109_vm1, %v209_v20, %v168_v28  ;;  %v211_v37 = vrot.slane %v168_v28, 4  ;;  %v1254_v38 = vsel %vm109_vm1, %v213_v26, %v176_v29 }
  0xaa   :  { %v215_v39 = vrot.slane %v176_v29, 4  ;;  %v1257_v40 = vsel %vm109_vm1, %v204_v2, %v219_v31 }
  0xab   :  { %v206_v41 = vsel %vm109_vm1, %v205_v33, %v164_v34  ;;  %v207_v42 = vrot.slane %v164_v34, 4  ;;  %v1261_v43 = vsel %vm109_vm1, %v192_v6, %v211_v37 }
  0xac   :  { %v259_v44 = vadd.f32 %v256_v35, %v206_v41  ;;  %v1264_v45 = vsel %vm109_vm1, %v200_v12, %v215_v39 }
  0xad   :  { %v208_v46 = vsel %vm109_vm1, %v188_v18, %v207_v42 }
  0xae   :  { %998 = vtanh.f32 %v259_v44  ;;  %v965_v49 = vmul.f32 -1.442695, %v259_v44 }
  0xb0   :  { %1000 = vpow2.f32 %v965_v49 }
  0xb4   :  { %v999_v47 = vpop.eup %998 }
  0xb5   :  { %286 = vrot.lane.b32.xlu0 %v999_v47, %s1064_s0 }
  0xb6   :  { %v1001_v50 = vpop.eup %1000 }
  0xb7   :  { %v263_v51 = vadd.f32 1.0, %v1001_v50 }
  0xb9   :  { %1002 = vrcp.f32 %v263_v51  ;;  %v275_v58 = vand.u32 2147483648, %v263_v51  ;;  %vm269_vm3 = vweird.f32 %v263_v51  ;;  %v273_v59 = vand.u32 2147483647, %v263_v51 }
  0xbb   :  { %v276_v61 = vor.u32 1.1754944e-38, %v275_v58  ;;  %vm274_vm5 = vcmp.eq.f32.partialorder %v273_v59, 8.507059e+37 }
  0xbd   :  { %281 = vrot.lane.b32.xlu0 %v230_v48, %s1065_s17 }
  0xbf   :  { %v1003_v52 = vpop.eup %1002 }
  0xc0   :  { %v265_v53 = vmul.f32 %v1003_v52, %v263_v51  ;;  %vm270_vm2 = vweird.f32 %v1003_v52 }
  0xc1   :  { %vm271_vm4 = vmor %vm269_vm3, %vm270_vm2 }
  0xc2   :  { %v266_v54 = vsub.f32 1.0, %v265_v53 }
  0xc4   :  { %v267_v55 = vmul.f32 %v1003_v52, %v266_v54 }
  0xc6   :  { %v268_v56 = vadd.f32 %v1003_v52, %v267_v55 }
  0xc8   :  { %v272_v60 = vsel %vm271_vm4, %v1003_v52, %v268_v56 }
  0xc9   :  { %v277_v63 = vsel %vm274_vm5, %v276_v61, %v272_v60 }
 0x127   :  { %v287_v62 = vpop.permute.xlu0 %286 }
 0x128   :  { %v289_v0 = vmul.f32 %v287_v62, %v277_v63 }
 0x12a   :  { %291 = vrot.lane.b32.xlu1 %v289_v0, %s1065_s17 }
 0x12f   :  { %v282_v1 = vpop.permute.xlu0 %281 }
 0x130   :  { %v284_v2 = vmul.f32 %v282_v1, %v277_v63 }
 0x19c   :  { %v292_v3 = vpop.permute.xlu1 %291 }
 0x19d   :  { %v294_v4 = vadd.f32 %v292_v3, %v284_v2 }
 0x19f   :  { %1004 = vtanh.f32 %v294_v4 }
 0x1a5   :  { %v1005_v5 = vpop.eup %1004 }
 0x1a6   :  { %297 = vrot.lane.b32.xlu1 %v1005_v5, %s1064_s0 }
 0x218   :  { %v298_v6 = vpop.permute.xlu1 %297 }
 0x219   :  { %v300_v7 = vmul.f32 %v298_v6, %v277_v63 }
 0x21b   :  { %302 = vrot.lane.b32.xlu2 %v300_v7, %s1065_s17 }
 0x275   :  { %v303_v11 = vpop.permute.xlu2 %302 }
 0x276   :  { %305 = vst.msk [vmem:[#allocation3] sm:$0xff] %vm42_vm0, %v303_v11  ;;  %966 = vmatmul.msk.f32.vlgmr.msrb.gmra.mxu2 %vm42_vm0, %v303_v11 }
 0x277   :  { %758 = vmatpush.msrb.mxu2 %v1141_v8 }
 0x279   :  { %759 = vmatpush.msrb.mxu2 %v1148_v9 }
 0x27b   :  { %760 = vmatpush.msrb.mxu2 %v1155_v10 }
 0x27d   :  { %761 = vmatpush.msrb.mxu2 %v1169_v13 }
 0x2f9   :  { %v331_v12 = vpop.f32.mrf.mxu2 }
 0x2fa   :  { %v334_v14 = vadd.f32 %v331_v12, %v208_v46 }
 0x2fc   :  { %1006 = vtanh.f32 %v334_v14  ;;  %v967_v16 = vmul.f32 -1.442695, %v334_v14 }
 0x2fe   :  { %1008 = vpow2.f32 %v967_v16 }
 0x302   :  { %v1007_v15 = vpop.eup %1006 }
 0x303   :  { %357 = vrot.lane.b32.xlu2 %v1007_v15, %s1064_s0 }
 0x304   :  { %v1009_v17 = vpop.eup %1008 }
 0x305   :  { %v338_v18 = vadd.f32 1.0, %v1009_v17 }
 0x307   :  { %1010 = vrcp.f32 %v338_v18  ;;  %v350_v10 = vand.u32 2147483648, %v338_v18  ;;  %vm344_vm7 = vweird.f32 %v338_v18  ;;  %v348_v13 = vand.u32 2147483647, %v338_v18 }
 0x309   :  { %v351_v23 = vor.u32 1.1754944e-38, %v350_v10  ;;  %vm349_vm9 = vcmp.eq.f32.partialorder %v348_v13, 8.507059e+37 }
 0x30d   :  { %v1011_v19 = vpop.eup %1010 }
 0x30e   :  { %v340_v20 = vmul.f32 %v1011_v19, %v338_v18  ;;  %vm345_vm6 = vweird.f32 %v1011_v19 }
 0x30f   :  { %vm346_vm8 = vmor %vm344_vm7, %vm345_vm6 }
 0x310   :  { %v341_v8 = vsub.f32 1.0, %v340_v20 }
 0x312   :  { %v342_v21 = vmul.f32 %v1011_v19, %v341_v8 }
 0x314   :  { %v343_v9 = vadd.f32 %v1011_v19, %v342_v21 }
 0x316   :  { %v347_v22 = vsel %vm346_vm8, %v1011_v19, %v343_v9 }
 0x317   :  { %v352_v25 = vsel %vm349_vm9, %v351_v23, %v347_v22 }
 0x318   :  { %v355_v28 = vmul.f32 %v352_v25, %v294_v4 }
 0x35d   :  { %v358_v24 = vpop.permute.xlu2 %357 }
 0x35e   :  { %v360_v26 = vmul.f32 %v358_v24, %v352_v25 }
 0x360   :  { %362 = vrot.lane.b32.xlu0 %v360_v26, %s1065_s17 }
 0x3d2   :  { %v363_v29 = vpop.permute.xlu0 %362 }
 0x3d3   :  { %v365_v31 = vadd.f32 %v363_v29, %v355_v28 }
 0x3d5   :  { %1012 = vtanh.f32 %v365_v31 }
 0x3db   :  { %v1013_v32 = vpop.eup %1012 }
 0x3dc   :  { %368 = vrot.lane.b32.xlu1 %v1013_v32, %s1064_s0 }
 0x44e   :  { %v369_v33 = vpop.permute.xlu1 %368 }
 0x44f   :  { %v371_v34 = vmul.f32 %v369_v33, %v352_v25 }
 0x451   :  { %373 = vrot.lane.b32.xlu2 %v371_v34, %s1065_s17 }
 0x4ab   :  { %v374_v35 = vpop.permute.xlu2 %373 }
 0x4ac   :  { %377 = vst.msk [vmem:[#allocation3 + $0x8] sm:$0xff] %vm42_vm0, %v374_v35  ;;  %968 = vmatmul.msk.f32.vlgmr.msrb.gmra.mxu3 %vm42_vm0, %v374_v35 }
 0x52f   :  { %v403_v37 = vpop.f32.mrf.mxu3 }
 0x530   :  { %v406_v39 = vadd.f32 %v403_v37, %v1251_v36 }
 0x532   :  { %1014 = vtanh.f32 %v406_v39  ;;  %v969_v42 = vmul.f32 -1.442695, %v406_v39 }
 0x534   :  { %1016 = vpow2.f32 %v969_v42 }
 0x538   :  { %v1015_v41 = vpop.eup %1014 }
 0x539   :  { %429 = vrot.lane.b32.xlu0 %v1015_v41, %s1064_s0 }
 0x53a   :  { %v1017_v44 = vpop.eup %1016 }
 0x53b   :  { %v410_v46 = vadd.f32 1.0, %v1017_v44 }
 0x53d   :  { %1018 = vrcp.f32 %v410_v46  ;;  %v422_v52 = vand.u32 2147483648, %v410_v46  ;;  %vm416_vm11 = vweird.f32 %v410_v46  ;;  %v420_v53 = vand.u32 2147483647, %v410_v46 }
 0x53f   :  { %v423_v54 = vor.u32 1.1754944e-38, %v422_v52  ;;  %vm421_vm13 = vcmp.eq.f32.partialorder %v420_v53, 8.507059e+37 }
 0x543   :  { %v1019_v47 = vpop.eup %1018 }
 0x544   :  { %v412_v48 = vmul.f32 %v1019_v47, %v410_v46  ;;  %vm417_vm10 = vweird.f32 %v1019_v47 }
 0x545   :  { %vm418_vm12 = vmor %vm416_vm11, %vm417_vm10 }
 0x546   :  { %v413_v49 = vsub.f32 1.0, %v412_v48 }
 0x548   :  { %v414_v50 = vmul.f32 %v1019_v47, %v413_v49 }
 0x54a   :  { %v415_v51 = vadd.f32 %v1019_v47, %v414_v50 }
 0x54c   :  { %v419_v36 = vsel %vm418_vm12, %v1019_v47, %v415_v51 }
 0x54d   :  { %v424_v56 = vsel %vm421_vm13, %v423_v54, %v419_v36 }
 0x54e   :  { %v427_v59 = vmul.f32 %v424_v56, %v365_v31 }
 0x5ab   :  { %v430_v55 = vpop.permute.xlu0 %429 }
 0x5ac   :  { %v432_v58 = vmul.f32 %v430_v55, %v424_v56 }
 0x5ae   :  { %434 = vrot.lane.b32.xlu1 %v432_v58, %s1065_s17 }
 0x620   :  { %v435_v60 = vpop.permute.xlu1 %434 }
 0x621   :  { %v437_v61 = vadd.f32 %v435_v60, %v427_v59 }
 0x623   :  { %1020 = vtanh.f32 %v437_v61 }
 0x629   :  { %v1021_v62 = vpop.eup %1020 }
 0x62a   :  { %440 = vrot.lane.b32.xlu2 %v1021_v62, %s1064_s0 }
 0x684   :  { %v441_v63 = vpop.permute.xlu2 %440 }
 0x685   :  { %v443_v0 = vmul.f32 %v441_v63, %v424_v56 }
 0x687   :  { %445 = vrot.lane.b32.xlu0 %v443_v0, %s1065_s17 }
 0x6f9   :  { %v446_v1 = vpop.permute.xlu0 %445 }
 0x6fa   :  { %449 = vst.msk [vmem:[#allocation3 + $0x10] sm:$0xff] %vm42_vm0, %v446_v1  ;;  %970 = vmatmul.msk.f32.vlgmr.msra.gmra.mxu1 %vm42_vm0, %v446_v1 }
 0x777   :  { %v475_v2 = vpop.f32.mrf.mxu1 }
 0x778   :  { %v478_v3 = vadd.f32 %v475_v2, %v1261_v43 }
 0x77a   :  { %1022 = vtanh.f32 %v478_v3  ;;  %v971_v5 = vmul.f32 -1.442695, %v478_v3 }
 0x77c   :  { %1024 = vpow2.f32 %v971_v5 }
 0x780   :  { %v1023_v4 = vpop.eup %1022 }
 0x781   :  { %501 = vrot.lane.b32.xlu1 %v1023_v4, %s1064_s0 }
 0x782   :  { %v1025_v6 = vpop.eup %1024 }
 0x783   :  { %v482_v7 = vadd.f32 1.0, %v1025_v6 }
 0x785   :  { %1026 = vrcp.f32 %v482_v7  ;;  %v494_v17 = vand.u32 2147483648, %v482_v7  ;;  %vm488_vm15 = vweird.f32 %v482_v7  ;;  %v492_v18 = vand.u32 2147483647, %v482_v7 }
 0x787   :  { %v495_v19 = vor.u32 1.1754944e-38, %v494_v17  ;;  %vm493_vm3 = vcmp.eq.f32.partialorder %v492_v18, 8.507059e+37 }
 0x78b   :  { %v1027_v11 = vpop.eup %1026 }
 0x78c   :  { %v484_v12 = vmul.f32 %v1027_v11, %v482_v7  ;;  %vm489_vm14 = vweird.f32 %v1027_v11 }
 0x78d   :  { %vm490_vm2 = vmor %vm488_vm15, %vm489_vm14 }
 0x78e   :  { %v485_v14 = vsub.f32 1.0, %v484_v12 }
 0x790   :  { %v486_v15 = vmul.f32 %v1027_v11, %v485_v14 }
 0x792   :  { %v487_v16 = vadd.f32 %v1027_v11, %v486_v15 }
 0x794   :  { %v491_v43 = vsel %vm490_vm2, %v1027_v11, %v487_v16 }
 0x795   :  { %v496_v8 = vsel %vm493_vm3, %v495_v19, %v491_v43 }
 0x796   :  { %v499_v9 = vmul.f32 %v496_v8, %v437_v61 }
 0x7f3   :  { %v502_v20 = vpop.permute.xlu1 %501 }
 0x7f4   :  { %v504_v21 = vmul.f32 %v502_v20, %v496_v8 }
 0x7f6   :  { %506 = vrot.lane.b32.xlu2 %v504_v21, %s1065_s17 }
 0x850   :  { %v507_v10 = vpop.permute.xlu2 %506 }
 0x851   :  { %v509_v13 = vadd.f32 %v507_v10, %v499_v9 }
 0x853   :  { %1028 = vtanh.f32 %v509_v13 }
 0x859   :  { %v1029_v22 = vpop.eup %1028 }
 0x85a   :  { %512 = vrot.lane.b32.xlu0 %v1029_v22, %s1064_s0 }
 0x8cc   :  { %v513_v23 = vpop.permute.xlu0 %512 }
 0x8cd   :  { %v515_v24 = vmul.f32 %v513_v23, %v496_v8 }
 0x8cf   :  { %517 = vrot.lane.b32.xlu1 %v515_v24, %s1065_s17 }
 0x941   :  { %v518_v25 = vpop.permute.xlu1 %517 }
 0x942   :  { %521 = vst.msk [vmem:[#allocation3 + $0x18] sm:$0xff] %vm42_vm0, %v518_v25  ;;  %972 = vmatmul.msk.f32.vlgmr.msra.gmra.mxu2 %vm42_vm0, %v518_v25 }
 0x9c5   :  { %v547_v26 = vpop.f32.mrf.mxu2 }
 0x9c6   :  { %v550_v28 = vadd.f32 %v547_v26, %v1254_v38 }
 0x9c8   :  { %1030 = vtanh.f32 %v550_v28  ;;  %v973_v31 = vmul.f32 -1.442695, %v550_v28 }
 0x9ca   :  { %1032 = vpow2.f32 %v973_v31 }
 0x9ce   :  { %v1031_v29 = vpop.eup %1030 }
 0x9cf   :  { %573 = vrot.lane.b32.xlu2 %v1031_v29, %s1064_s0 }
 0x9d0   :  { %v1033_v32 = vpop.eup %1032 }
 0x9d1   :  { %v554_v33 = vadd.f32 1.0, %v1033_v32 }
 0x9d3   :  { %1034 = vrcp.f32 %v554_v33  ;;  %v566_v42 = vand.u32 2147483648, %v554_v33  ;;  %vm560_vm5 = vweird.f32 %v554_v33  ;;  %v564_v44 = vand.u32 2147483647, %v554_v33 }
 0x9d5   :  { %v567_v46 = vor.u32 1.1754944e-38, %v566_v42  ;;  %vm565_vm7 = vcmp.eq.f32.partialorder %v564_v44, 8.507059e+37 }
 0x9d9   :  { %v1035_v34 = vpop.eup %1034 }
 0x9da   :  { %v556_v35 = vmul.f32 %v1035_v34, %v554_v33  ;;  %vm561_vm4 = vweird.f32 %v1035_v34 }
 0x9db   :  { %vm562_vm6 = vmor %vm560_vm5, %vm561_vm4 }
 0x9dc   :  { %v557_v37 = vsub.f32 1.0, %v556_v35 }
 0x9de   :  { %v558_v39 = vmul.f32 %v1035_v34, %v557_v37 }
 0x9e0   :  { %v559_v41 = vadd.f32 %v1035_v34, %v558_v39 }
 0x9e2   :  { %v563_v38 = vsel %vm562_vm6, %v1035_v34, %v559_v41 }
 0x9e3   :  { %v568_v48 = vsel %vm565_vm7, %v567_v46, %v563_v38 }
 0x9e4   :  { %v571_v50 = vmul.f32 %v568_v48, %v509_v13 }
 0xa29   :  { %v574_v47 = vpop.permute.xlu2 %573 }
 0xa2a   :  { %v576_v49 = vmul.f32 %v574_v47, %v568_v48 }
 0xa2c   :  { %578 = vrot.lane.b32.xlu0 %v576_v49, %s1065_s17 }
 0xa9e   :  { %v579_v51 = vpop.permute.xlu0 %578 }
 0xa9f   :  { %v581_v52 = vadd.f32 %v579_v51, %v571_v50 }
 0xaa1   :  { %1036 = vtanh.f32 %v581_v52 }
 0xaa7   :  { %v1037_v53 = vpop.eup %1036 }
 0xaa8   :  { %584 = vrot.lane.b32.xlu1 %v1037_v53, %s1064_s0 }
 0xb1a   :  { %v585_v36 = vpop.permute.xlu1 %584 }
 0xb1b   :  { %v587_v54 = vmul.f32 %v585_v36, %v568_v48 }
 0xb1d   :  { %589 = vrot.lane.b32.xlu2 %v587_v54, %s1065_s17 }
 0xb77   :  { %v590_v55 = vpop.permute.xlu2 %589 }
 0xb78   :  { %593 = vst.msk [vmem:[#allocation3 + $0x20] sm:$0xff] %vm42_vm0, %v590_v55  ;;  %974 = vmatmul.msk.f32.vlgmr.msra.gmra.mxu3 %vm42_vm0, %v590_v55 }
 0xbfb   :  { %v619_v56 = vpop.f32.mrf.mxu3 }
 0xbfc   :  { %v622_v58 = vadd.f32 %v619_v56, %v1264_v45 }
 0xbfe   :  { %1038 = vtanh.f32 %v622_v58  ;;  %v975_v60 = vmul.f32 -1.442695, %v622_v58 }
 0xc00   :  { %1040 = vpow2.f32 %v975_v60 }
 0xc04   :  { %v1039_v59 = vpop.eup %1038 }
 0xc05   :  { %645 = vrot.lane.b32.xlu0 %v1039_v59, %s1064_s0 }
 0xc06   :  { %v1041_v61 = vpop.eup %1040 }
 0xc07   :  { %v626_v62 = vadd.f32 1.0, %v1041_v61 }
 0xc09   :  { %1042 = vrcp.f32 %v626_v62  ;;  %v638_v4 = vand.u32 2147483648, %v626_v62  ;;  %vm632_vm9 = vweird.f32 %v626_v62  ;;  %v636_v5 = vand.u32 2147483647, %v626_v62 }
 0xc0b   :  { %v639_v6 = vor.u32 1.1754944e-38, %v638_v4  ;;  %vm637_vm11 = vcmp.eq.f32.partialorder %v636_v5, 8.507059e+37 }
 0xc0f   :  { %v1043_v63 = vpop.eup %1042 }
 0xc10   :  { %v628_v0 = vmul.f32 %v1043_v63, %v626_v62  ;;  %vm633_vm8 = vweird.f32 %v1043_v63 }
 0xc11   :  { %vm634_vm10 = vmor %vm632_vm9, %vm633_vm8 }
 0xc12   :  { %v629_v1 = vsub.f32 1.0, %v628_v0 }
 0xc14   :  { %v630_v2 = vmul.f32 %v1043_v63, %v629_v1 }
 0xc16   :  { %v631_v3 = vadd.f32 %v1043_v63, %v630_v2 }
 0xc18   :  { %v635_v45 = vsel %vm634_vm10, %v1043_v63, %v631_v3 }
 0xc19   :  { %v640_v11 = vsel %vm637_vm11, %v639_v6, %v635_v45  ;;  %v813_v45 = vld [vmem:[#allocation3 + $0x18] sm:$0xff]  ;;  %v810_v6 = vld [vmem:[#allocation3] sm:$0xff] }
 0xc1a   :  { %v643_v14 = vmul.f32 %v640_v11, %v581_v52 }
 0xc77   :  { %v646_v7 = vpop.permute.xlu0 %645 }
 0xc78   :  { %v648_v12 = vmul.f32 %v646_v7, %v640_v11  ;;  %v811_v7 = vld [vmem:[#allocation3 + $0x8] sm:$0xff] }
 0xc7a   :  { %650 = vrot.lane.b32.xlu1 %v648_v12, %s1065_s17  ;;  %v830_v12 = vrot.slane %v813_v45, 4 }
 0xcec   :  { %v651_v15 = vpop.permute.xlu1 %650 }
 0xced   :  { %v653_v16 = vadd.f32 %v651_v15, %v643_v14  ;;  %v820_v14 = vrot.slane %v810_v6, 4  ;;  %v832_v15 = vrot.slane %v811_v7, 4 }
 0xcef   :  { %1044 = vtanh.f32 %v653_v16 }
 0xcf5   :  { %v1045_v17 = vpop.eup %1044 }
 0xcf6   :  { %656 = vrot.lane.b32.xlu2 %v1045_v17, %s1064_s0 }
 0xd50   :  { %v657_v18 = vpop.permute.xlu2 %656 }
 0xd51   :  { %v659_v43 = vmul.f32 %v657_v18, %v640_v11  ;;  %v812_v11 = vld [vmem:[#allocation3 + $0x10] sm:$0xff]  ;;  %v831_v18 = vsel %vm109_vm1, %v830_v12, %v811_v7 }
 0xd52   :  { %v821_v17 = vsel %vm109_vm1, %v812_v11, %v820_v14 }
 0xd53   :  { %661 = vrot.lane.b32.xlu0 %v659_v43, %s1065_s17  ;;  %v833_v43 = vsel %vm109_vm1, %v813_v45, %v832_v15 }
 0xdc5   :  { %v662_v19 = vpop.permute.xlu0 %661 }
 0xdc6   :  { %665 = vst.msk [vmem:[#allocation3 + $0x28] sm:$0xff] %vm42_vm0, %v662_v19  ;;  %976 = vmatmul.msk.f32.vlgmr.msrb.gmra.mxu1 %vm42_vm0, %v662_v19  ;;  %v814_v19 = vld [vmem:[#allocation3 + $0x20] sm:$0xff] }
 0xe43   :  { %v691_v20 = vpop.f32.mrf.mxu1 }
 0xe44   :  { %v694_v8 = vadd.f32 %v691_v20, %v1246_v30 }
 0xe46   :  { %1046 = vtanh.f32 %v694_v8  ;;  %v977_v9 = vmul.f32 -1.442695, %v694_v8 }
 0xe48   :  { %1048 = vpow2.f32 %v977_v9  ;;  %v837_v9 = vperm.slane %v831_v18, %v1211_v27 }
 0xe4c   :  { %v1047_v21 = vpop.eup %1046 }
 0xe4d   :  { %717 = vrot.lane.b32.xlu1 %v1047_v21, %s1064_s0  ;;  %v829_v21 = vperm.slane %v821_v17, %v1211_v27 }
 0xe4e   :  { %v1049_v10 = vpop.eup %1048 }
 0xe4f   :  { %v698_v13 = vadd.f32 1.0, %v1049_v10  ;;  %v841_v10 = vperm.slane %v833_v43, %v1211_v27 }
 0xe51   :  { %1050 = vrcp.f32 %v698_v13  ;;  %v710_v28 = vand.u32 2147483648, %v698_v13  ;;  %vm704_vm13 = vweird.f32 %v698_v13  ;;  %v708_v29 = vand.u32 2147483647, %v698_v13 }
 0xe53   :  { %v711_v31 = vor.u32 1.1754944e-38, %v710_v28  ;;  %vm709_vm15 = vcmp.eq.f32.partialorder %v708_v29, 8.507059e+37  ;;  %v866_v28 = vrot.slane %v837_v9, 4  ;;  %v878_v29 = vrot.slane %v841_v10, 4 }
 0xe57   :  { %v1051_v22 = vpop.eup %1050 }
 0xe58   :  { %v700_v23 = vmul.f32 %v1051_v22, %v698_v13  ;;  %vm705_vm12 = vweird.f32 %v1051_v22 }
 0xe59   :  { %vm706_vm14 = vmor %vm704_vm13, %vm705_vm12 }
 0xe5a   :  { %v701_v24 = vsub.f32 1.0, %v700_v23 }
 0xe5c   :  { %v702_v25 = vmul.f32 %v1051_v22, %v701_v24 }
 0xe5e   :  { %v703_v26 = vadd.f32 %v1051_v22, %v702_v25 }
 0xe60   :  { %v707_v30 = vsel %vm706_vm14, %v1051_v22, %v703_v26  ;;  %v844_v22 = vrot.slane %v814_v19, 4  ;;  %v880_v26 = vrot.slane %v829_v21, 4 }
 0xe61   :  { %v712_v33 = vsel %vm709_vm15, %v711_v31, %v707_v30  ;;  %v815_v30 = vld [vmem:[#allocation3 + $0x28] sm:$0xff] }
 0xe62   :  { %v715_v35 = vmul.f32 %v712_v33, %v653_v16  ;;  %v818_v16 = vrot.slane %v812_v11, 4 }
 0xe64   :  { %v819_v8 = vsel %vm109_vm1, %v818_v16, %v810_v6 }
 0xe65   :  { %v825_v24 = vperm.slane %v819_v8, %v1211_v27 }
 0xebf   :  { %v718_v32 = vpop.permute.xlu1 %717 }
 0xec0   :  { %v720_v34 = vmul.f32 %v718_v32, %v712_v33  ;;  %v868_v32 = vrot.slane %v825_v24, 4 }
 0xec2   :  { %722 = vrot.lane.b32.xlu2 %v720_v34, %s1065_s17 }
 0xf1c   :  { %v723_v37 = vpop.permute.xlu2 %722 }
 0xf1d   :  { %v725_v39 = vadd.f32 %v723_v37, %v715_v35  ;;  %v856_v35 = vrot.slane %v815_v30, 4  ;;  %v867_v37 = vsel %vm109_vm1, %v866_v28, %v825_v24 }
 0xf1f   :  { %1052 = vtanh.f32 %v725_v39 }
 0xf25   :  { %v1053_v41 = vpop.eup %1052 }
 0xf26   :  { %728 = vrot.lane.b32.xlu0 %v1053_v41, %s1064_s0  ;;  %v879_v41 = vsel %vm109_vm1, %v878_v29, %v829_v21 }
 0xf98   :  { %v729_v42 = vpop.permute.xlu0 %728 }
 0xf99   :  { %v731_v44 = vmul.f32 %v729_v42, %v712_v33  ;;  %v881_v33 = vsel %vm109_vm1, %v841_v10, %v880_v26 }
 0xf9b   :  { %733 = vrot.lane.b32.xlu1 %v731_v44, %s1065_s17 }
0x100d   :  { %v734_v38 = vpop.permute.xlu1 %733 }
0x100e   :  { %737 = vst.msk [vmem:[#allocation3 + $0x30] sm:$0xff] %vm42_vm0, %v734_v38  ;;  %978 = vmatmul.msk.f32.vlgmr.msrb.gmra.mxu2 %vm42_vm0, %v734_v38  ;;  %v889_v38 = vperm.slane %v881_v33, %v1224_v57 }
0x1015   :  { %v816_v20 = vld [vmem:[#allocation3 + $0x30] sm:$0xff] }
0x1016   :  { %v842_v23 = vrot.slane %v816_v20, 4  ;;  %v845_v25 = vsel %vm109_vm1, %v816_v20, %v844_v22 }
0x1017   :  { %v853_v34 = vperm.slane %v845_v25, %v1211_v27 }
0x1018   :  { %v843_v31 = vsel %vm109_vm1, %v842_v23, %v814_v19 }
0x1019   :  { %v849_v42 = vperm.slane %v843_v31, %v1211_v27 }
0x1091   :  { %v763_v46 = vpop.f32.mrf.mxu2 }
0x1092   :  { %v766_v47 = vadd.f32 %v763_v46, %v1257_v40 }
0x1094   :  { %1054 = vtanh.f32 %v766_v47  ;;  %v979_v49 = vmul.f32 -1.442695, %v766_v47 }
0x1096   :  { %1056 = vpow2.f32 %v979_v49 }
0x109a   :  { %v1055_v48 = vpop.eup %1054 }
0x109b   :  { %789 = vrot.lane.b32.xlu2 %v1055_v48, %s1064_s0  ;;  %v904_v48 = vrot.slane %v853_v34, 4 }
0x109c   :  { %v1057_v50 = vpop.eup %1056 }
0x109d   :  { %v770_v51 = vadd.f32 1.0, %v1057_v50  ;;  %v873_v50 = vperm.slane %v867_v37, %v1224_v57 }
0x109f   :  { %1058 = vrcp.f32 %v770_v51  ;;  %v782_v56 = vand.u32 2147483648, %v770_v51  ;;  %vm776_vm3 = vweird.f32 %v770_v51  ;;  %v780_v58 = vand.u32 2147483647, %v770_v51 }
0x10a1   :  { %v783_v59 = vor.u32 1.1754944e-38, %v782_v56  ;;  %vm781_vm5 = vcmp.eq.f32.partialorder %v780_v58, 8.507059e+37  ;;  %v928_v58 = vrot.slane %v889_v38, 4 }
0x10a5   :  { %v1059_v52 = vpop.eup %1058 }
0x10a6   :  { %v772_v53 = vmul.f32 %v1059_v52, %v770_v51  ;;  %vm777_vm2 = vweird.f32 %v1059_v52 }
0x10a7   :  { %vm778_vm4 = vmor %vm776_vm3, %vm777_vm2 }
0x10a8   :  { %v773_v36 = vsub.f32 1.0, %v772_v53 }
0x10aa   :  { %v774_v54 = vmul.f32 %v1059_v52, %v773_v36  ;;  %v892_v36 = vrot.slane %v849_v42, 4 }
0x10ac   :  { %v775_v55 = vadd.f32 %v1059_v52, %v774_v54 }
0x10ae   :  { %v779_v40 = vsel %vm778_vm4, %v1059_v52, %v775_v55  ;;  %v885_v52 = vperm.slane %v879_v41, %v1224_v57 }
0x10af   :  { %v784_v61 = vsel %vm781_vm5, %v783_v59, %v779_v40 }
0x10b0   :  { %v787_v63 = vmul.f32 %v784_v61, %v725_v39  ;;  %v869_v39 = vsel %vm109_vm1, %v837_v9, %v868_v32 }
0x10b1   :  { %v877_v51 = vperm.slane %v869_v39, %v1224_v57 }
0x10f5   :  { %v790_v60 = vpop.permute.xlu2 %789 }
0x10f6   :  { %v792_v62 = vmul.f32 %v790_v60, %v784_v61 }
0x10f8   :  { %794 = vrot.lane.b32.xlu0 %v792_v62, %s1065_s17  ;;  %v920_v62 = vrot.slane %v877_v51, 4 }
0x116a   :  { %v795_v0 = vpop.permute.xlu0 %794 }
0x116b   :  { %v797_v1 = vadd.f32 %v795_v0, %v787_v63 }
0x116d   :  { %1060 = vtanh.f32 %v797_v1  ;;  %940 = vrot.lane.b32.xlu0 %v797_v1, %s1066_s2 }
0x1173   :  { %v1061_v2 = vpop.eup %1060 }
0x1174   :  { %800 = vrot.lane.b32.xlu1 %v1061_v2, %s1064_s0  ;;  %v916_v2 = vrot.slane %v873_v50, 4 }
0x11df   :  { %v941_v3 = vpop.permute.xlu0 %940 }
0x11e0   :  { %943 = vst.msk [vmem:[%s1414_s8] sm:$0xff] %vm42_vm0, %v941_v3 }
0x11e6   :  { %v801_v4 = vpop.permute.xlu1 %800 }
0x11e7   :  { %v803_v5 = vmul.f32 %v801_v4, %v784_v61 }
0x11e9   :  { %805 = vrot.lane.b32.xlu2 %v803_v5, %s1065_s17 }
0x1243   :  { %v806_v13 = vpop.permute.xlu2 %805 }
0x1244   :  { %809 = vst.msk [vmem:[#allocation3 + $0x38] sm:$0xff] %vm42_vm0, %v806_v13 }
0x1245   :  { %938 = vst.msk [vmem:[%s1415_s7] sm:$0xff] %vm42_vm0, %v806_v13 }
0x124b   :  { %v817_v44 = vld [vmem:[#allocation3 + $0x38] sm:$0xff] }
0x124c   :  { %v854_v46 = vrot.slane %v817_v44, 4  ;;  %v857_v47 = vsel %vm109_vm1, %v817_v44, %v856_v35 }
0x124d   :  { %v865_v49 = vperm.slane %v857_v47, %v1211_v27 }
0x124e   :  { %v855_v53 = vsel %vm109_vm1, %v854_v46, %v815_v30 }
0x124f   :  { %v861_v54 = vperm.slane %v855_v53, %v1211_v27  ;;  %v902_v55 = vrot.slane %v865_v49, 4  ;;  %v905_v56 = vsel %vm109_vm1, %v865_v49, %v904_v48  ;;  %v924_v27 = vrot.slane %v885_v52, 4 }
0x1250   :  { %v913_v40 = vperm.slane %v905_v56, %v1224_v57 }
0x1251   :  { %v890_v59 = vrot.slane %v861_v54, 4  ;;  %v893_v60 = vsel %vm109_vm1, %v861_v54, %v892_v36  ;;  %v903_v61 = vsel %vm109_vm1, %v902_v55, %v853_v34 }
0x1252   :  { %v901_v63 = vperm.slane %v893_v60, %v1224_v57  ;;  %v909_v0 = vperm.slane %v903_v61, %v1224_v57  ;;  %v929_v1 = vsel %vm109_vm1, %v913_v40, %v928_v58  ;;  %v926_v4 = vrot.slane %v913_v40, 4 }
0x1253   :  { %v891_v3 = vsel %vm109_vm1, %v890_v59, %v849_v42  ;;  %937 = vst.msk [vmem:[%s1416_s6 + $0x38] sm:$0xff] %vm42_vm0, %v929_v1 }
0x1254   :  { %v897_v5 = vperm.slane %v891_v3, %v1224_v57  ;;  %v918_v45 = vrot.slane %v901_v63, 4  ;;  %v921_v6 = vsel %vm109_vm1, %v901_v63, %v920_v62  ;;  %v922_v7 = vrot.slane %v909_v0, 4 }
0x1255   :  { %v925_v11 = vsel %vm109_vm1, %v909_v0, %v924_v27  ;;  %933 = vst.msk [vmem:[%s1416_s6 + $0x18] sm:$0xff] %vm42_vm0, %v921_v6  ;;  %v927_v17 = vsel %vm109_vm1, %v926_v4, %v889_v38 }
0x1256   :  { %v914_v12 = vrot.slane %v897_v5, 4  ;;  %v917_v14 = vsel %vm109_vm1, %v897_v5, %v916_v2  ;;  %v919_v15 = vsel %vm109_vm1, %v918_v45, %v877_v51  ;;  %935 = vst.msk [vmem:[%s1416_s6 + $0x28] sm:$0xff] %vm42_vm0, %v925_v11  ;;  %v923_v57 = vsel %vm109_vm1, %v922_v7, %v885_v52 }
0x1257   :  { %931 = vst.msk [vmem:[%s1416_s6 + $0x8] sm:$0xff] %vm42_vm0, %v917_v14 }
0x1258   :  { %v915_v16 = vsel %vm109_vm1, %v914_v12, %v873_v50  ;;  %932 = vst.msk [vmem:[%s1416_s6 + $0x10] sm:$0xff] %vm42_vm0, %v919_v15 }
0x1259   :  { %930 = vst.msk [vmem:[%s1416_s6] sm:$0xff] %vm42_vm0, %v915_v16 }
0x125a   :  { %934 = vst.msk [vmem:[%s1416_s6 + $0x20] sm:$0xff] %vm42_vm0, %v923_v57 }
0x125b   :  { %936 = vst.msk [vmem:[%s1416_s6 + $0x30] sm:$0xff] %vm42_vm0, %v927_v17 }

</bundles_post_ra>
